<compile_context>
chip_gen: v5e
topology: v5e:2x2
jax: 0.10.0
libtpu: 0.0.40
codegen_flags: <defaults>
</compile_context>

<pallas_src>
import functools

import jax
import jax.numpy as jnp
from jax.experimental import pallas as pl
from jax.experimental.pallas import tpu as pltpu


# ---------------------------------------------------------------------------
# Pallas kernels
# ---------------------------------------------------------------------------

def recurrent_kernel(h0_ref, src0_ref, src1_ref, tgt_ref,
                     e0_wih_ref, e0_whh_ref, e0_b_ref,
                     e1_wih_ref, e1_whh_ref, e1_b_ref,
                     d_wih_ref, d_whh_ref, d_b_ref,
                     mem0_ref, mem1_ref, hall_ref, *, use_external_h0):
    """Both tanh-RNN encoders + decoder recurrence, fully resident in VMEM.

    src*_ref: (S*, B, E)  embedded sources
    tgt_ref:  (T, B, E)   embedded target (already tgt[:-1])
    h0_ref:   (B, H)      external decoder init state (only if use_external_h0)
    mem*_ref: (S*, B, H)  memory banks (time-major, lane-dense stores)
    hall_ref: (T, B, H)   decoder hidden states for every target step
    """

    def run_rnn(x_ref, wih_ref, whh_ref, b_ref, out_ref, h_init):
        L, B, E = x_ref.shape
        Hd = whh_ref.shape[1]
        # Hoisted input projection: one (L*B, E) @ (E, H) matmul (+ bias, once).
        pre = (jnp.dot(x_ref[...].reshape(L * B, E), wih_ref[...],
                       preferred_element_type=jnp.float32)
               + b_ref[...]).reshape(L, B, Hd)
        w_hh = whh_ref[...]          # only weight kept live across the loop
        h = h_init
        for t in range(L):           # static unroll: only h @ W_hh is serial
            h = jnp.tanh(pre[t] + jnp.dot(h, w_hh,
                                          preferred_element_type=jnp.float32))
            out_ref[t] = h.astype(out_ref.dtype)
        return h

    B = src0_ref.shape[1]
    H = e0_whh_ref.shape[1]
    zero_h = jnp.zeros((B, H), jnp.float32)

    hf0 = run_rnn(src0_ref, e0_wih_ref, e0_whh_ref, e0_b_ref, mem0_ref, zero_h)
    hf1 = run_rnn(src1_ref, e1_wih_ref, e1_whh_ref, e1_b_ref, mem1_ref, zero_h)

    if use_external_h0:                    # static (truncated-BPTT carry-over)
        h_init = h0_ref[...].astype(jnp.float32)
    else:                                  # init_state: mean of encoder finals
        h_init = (hf0 + hf1) * 0.5

    run_rnn(tgt_ref, d_wih_ref, d_whh_ref, d_b_ref, hall_ref, h_init)


def attention_kernel(h_ref, mem0_ref, mem1_ref, mask0_ref, mask1_ref,
                     w_out_ref, b_out_ref, dec_ref, attn0_ref, attn1_ref):
    """Batched Luong dot attention over two banks + fused output projection.

    h_ref:    (B, T, H)   decoder hidden states (batch-major)
    mem*_ref: (B, S*, H)  memory banks (batch-major)
    mask*:    (B, S*)     additive length mask (0 valid / -1e9 pad)
    w_out:    (3H, H)     fused [Wc0 ; Wc1 ; Wh]
    dec_ref:  (B, T, H)   decoder outputs (transposed to (T,B,H) by the wrapper)
    attn*:    (B, T, S*)  attention distributions
    """
    B, T, H = h_ref.shape
    h_bt = h_ref[...]
    mem0 = mem0_ref[...]
    mem1 = mem1_ref[...]

    def attend(mem, mask):
        s = jnp.einsum('btd,bsd->bts', h_bt, mem,
                       preferred_element_type=jnp.float32) + mask[:, None, :]
        m = jnp.max(s, axis=-1, keepdims=True)
        e = jnp.exp(s - m)
        a = e * pl.reciprocal(jnp.sum(e, axis=-1, keepdims=True), approx=True)
        c = jnp.einsum('bts,bsd->btd', a, mem,
                       preferred_element_type=jnp.float32)
        return a, c

    a0, c0 = attend(mem0, mask0_ref[...])
    a1, c1 = attend(mem1, mask1_ref[...])

    # Fused output projection: [c0 | c1 | h] @ [Wc0 ; Wc1 ; Wh]  (K = 3H).
    feat = jnp.concatenate([c0, c1, h_bt], axis=-1).reshape(B * T, 3 * H)
    out = jnp.tanh(jnp.dot(feat, w_out_ref[...],
                           preferred_element_type=jnp.float32) + b_out_ref[...])

    dec_ref[...] = out.reshape(B, T, H).astype(dec_ref.dtype)
    attn0_ref[...] = a0.astype(attn0_ref.dtype)
    attn1_ref[...] = a1.astype(attn1_ref.dtype)


# ---------------------------------------------------------------------------
# pallas_call wrappers
# ---------------------------------------------------------------------------

def _vmem_specs(n):
    return [pl.BlockSpec(memory_space=pltpu.MemorySpace.VMEM) for _ in range(n)]


def run_recurrent(h0, src0_emb, src1_emb, tgt_emb, p, use_external_h0):
    S0, B, _ = src0_emb.shape
    S1 = src1_emb.shape[0]
    T = tgt_emb.shape[0]
    H = p['dec_w_hh'].shape[0]
    kernel = functools.partial(recurrent_kernel,
                               use_external_h0=use_external_h0)
    mem0, mem1, h_all = pl.pallas_call(
        kernel,
        out_shape=(jax.ShapeDtypeStruct((S0, B, H), jnp.float32),
                   jax.ShapeDtypeStruct((S1, B, H), jnp.float32),
                   jax.ShapeDtypeStruct((T, B, H), jnp.float32)),
        in_specs=_vmem_specs(13),
        out_specs=tuple(_vmem_specs(3)),
    )(h0, src0_emb, src1_emb, tgt_emb,
      p['enc0_w_ih'], p['enc0_w_hh'], p['enc0_b'],
      p['enc1_w_ih'], p['enc1_w_hh'], p['enc1_b'],
      p['dec_w_ih'], p['dec_w_hh'], p['dec_b_rnn'])
    return mem0, mem1, h_all


def run_attention(h_bt, mem0_bt, mem1_bt, mask0, mask1, w_out, b_out):
    B, T, H = h_bt.shape
    S0, S1 = mem0_bt.shape[1], mem1_bt.shape[1]
    dec_bt, a0_bt, a1_bt = pl.pallas_call(
        attention_kernel,
        out_shape=(jax.ShapeDtypeStruct((B, T, H), jnp.float32),
                   jax.ShapeDtypeStruct((B, T, S0), jnp.float32),
                   jax.ShapeDtypeStruct((B, T, S1), jnp.float32)),
        in_specs=_vmem_specs(7),
        out_specs=tuple(_vmem_specs(3)),
    )(h_bt, mem0_bt, mem1_bt, mask0, mask1, w_out, b_out)
    return dec_bt, a0_bt, a1_bt


# ---------------------------------------------------------------------------
# MultiSrcNMTModel (mirrors the PyTorch forward structure)
# ---------------------------------------------------------------------------

class MultiSrcNMTModel:
    def __init__(self, params, n_src=2):
        self.params = params
        self.n_src = n_src
        self._dec_state = None        # decoder hidden carried across bptt chunks

    def forward(self, srcs, tgt, length_tuples, bptt=False):
        p = self.params
        tgt = tgt[:-1]

        # Embedding lookups (plain-JAX gathers).
        src0_emb = p['enc0_emb'][srcs[0]]           # (S0, B, E)
        src1_emb = p['enc1_emb'][srcs[1]]           # (S1, B, E)
        tgt_emb = p['dec_emb'][tgt]                 # (T,  B, E)

        B = src0_emb.shape[1]
        H = p['dec_w_hh'].shape[0]
        use_external_h0 = bool(bptt) and (self._dec_state is not None)
        h0 = self._dec_state if use_external_h0 else jnp.zeros((B, H), jnp.float32)

        # Pass 1: encoders + decoder recurrence (fused, sequential part only).
        mem0, mem1, h_all = run_recurrent(h0, src0_emb, src1_emb, tgt_emb,
                                          p, use_external_h0)
        self._dec_state = h_all[-1]                 # for truncated-BPTT carry

        # Batch-major views + additive length masks for the batched pass.
        h_bt = jnp.transpose(h_all, (1, 0, 2))      # (B, T, H)
        mem0_bt = jnp.transpose(mem0, (1, 0, 2))    # (B, S0, H)
        mem1_bt = jnp.transpose(mem1, (1, 0, 2))    # (B, S1, H)
        masks = []
        for mem_bt, lengths in zip((mem0_bt, mem1_bt), length_tuples):
            S = mem_bt.shape[1]
            valid = jnp.arange(S)[None, :] < lengths[:, None]
            masks.append(jnp.where(valid, 0.0, -1e9).astype(jnp.float32))

        # Fused output-projection weight [Wc0 ; Wc1 ; Wh]  -> (3H, H).
        w_out = jnp.concatenate([p['dec_w_c0'], p['dec_w_c1'], p['dec_w_h']],
                                axis=0)

        # Pass 2: batched attention + output projection.
        dec_bt, a0_bt, a1_bt = run_attention(h_bt, mem0_bt, mem1_bt,
                                             masks[0], masks[1],
                                             w_out, p['dec_b_out'])

        dec_out = jnp.transpose(dec_bt, (1, 0, 2))          # (T, B, H)
        attns = {'std_0': jnp.transpose(a0_bt, (1, 0, 2)),  # (T, B, S0)
                 'std_1': jnp.transpose(a1_bt, (1, 0, 2))}  # (T, B, S1)
        return dec_out, attns


# ---------------------------------------------------------------------------
# Deterministic parameter init + pure-JAX reference for validation
# ---------------------------------------------------------------------------

def init_params(key, src_vocab, tgt_vocab, E, H, n_src=2):
    keys = iter(jax.random.split(key, 32))

    def nrm(shape, scale=0.1):
        return (scale * jax.random.normal(next(keys), shape)).astype(jnp.float32)

    p = {}
    for i in range(n_src):
        p[f'enc{i}_emb'] = nrm((src_vocab, E))
        p[f'enc{i}_w_ih'] = nrm((E, H))
        p[f'enc{i}_w_hh'] = nrm((H, H))
        p[f'enc{i}_b'] = jnp.zeros((1, H), jnp.float32)
    p['dec_emb'] = nrm((tgt_vocab, E))
    p['dec_w_ih'] = nrm((E, H))
    p['dec_w_hh'] = nrm((H, H))
    p['dec_b_rnn'] = jnp.zeros((1, H), jnp.float32)
    p['dec_w_c0'] = nrm((H, H))
    p['dec_w_c1'] = nrm((H, H))
    p['dec_w_h'] = nrm((H, H))
    p['dec_b_out'] = jnp.zeros((1, H), jnp.float32)
    return p


def reference_forward(params, srcs, tgt, length_tuples):
    def run_enc(i, src):
        emb = params[f'enc{i}_emb'][src]
        S, B, _ = emb.shape
        H = params[f'enc{i}_w_hh'].shape[0]
        h = jnp.zeros((B, H), jnp.float32)
        mems = []
        for t in range(S):
            h = jnp.tanh(emb[t] @ params[f'enc{i}_w_ih']
                         + h @ params[f'enc{i}_w_hh'] + params[f'enc{i}_b'])
            mems.append(h)
        return h, jnp.stack(mems, axis=0)

    h0s, mems = [], []
    for i, src in enumerate(srcs):
        h, m = run_enc(i, src)
        h0s.append(h)
        mems.append(m)
    h = sum(h0s) / float(len(h0s))

    tgt = tgt[:-1]
    emb = params['dec_emb'][tgt]
    T = emb.shape[0]
    mems_b = [jnp.transpose(m, (1, 0, 2)) for m in mems]
    masks = []
    for m, lengths in zip(mems_b, length_tuples):
        S = m.shape[1]
        valid = jnp.arange(S)[None, :] < lengths[:, None]
        masks.append(jnp.where(valid, 0.0, -1e9).astype(jnp.float32))

    def attend(h, mem, mask):
        scores = jnp.einsum('bd,bsd->bs', h, mem) + mask
        a = jax.nn.softmax(scores, axis=-1)
        ctx = jnp.einsum('bs,bsd->bd', a, mem)
        return a, ctx

    dec_outs, a0s, a1s = [], [], []
    for t in range(T):
        h = jnp.tanh(emb[t] @ params['dec_w_ih']
                     + h @ params['dec_w_hh'] + params['dec_b_rnn'])
        a0, c0 = attend(h, mems_b[0], masks[0])
        a1, c1 = attend(h, mems_b[1], masks[1])
        out = jnp.tanh(c0 @ params['dec_w_c0'] + c1 @ params['dec_w_c1']
                       + h @ params['dec_w_h'] + params['dec_b_out'])
        dec_outs.append(out)
        a0s.append(a0)
        a1s.append(a1)
    return jnp.stack(dec_outs), {'std_0': jnp.stack(a0s), 'std_1': jnp.stack(a1s)}


# ---------------------------------------------------------------------------
# Main
# ---------------------------------------------------------------------------

if __name__ == "__main__":
    SRC_VOCAB, TGT_VOCAB = 20, 20
    E = H = 128          # embedding / hidden dims (lane-friendly)
    B = 8                # batch
    S0 = S1 = 8          # source lengths (two sources)
    T_IN = 9             # raw tgt length (forward slices tgt[:-1] -> 8)

    key = jax.random.PRNGKey(0)
    kp, k1, k2, k3, kl1, kl2 = jax.random.split(key, 6)
    params = init_params(kp, SRC_VOCAB, TGT_VOCAB, E, H)

    src0 = jax.random.randint(k1, (S0, B), 0, SRC_VOCAB, dtype=jnp.int32)
    src1 = jax.random.randint(k2, (S1, B), 0, SRC_VOCAB, dtype=jnp.int32)
    tgt = jax.random.randint(k3, (T_IN, B), 0, TGT_VOCAB, dtype=jnp.int32)
    len0 = jax.random.randint(kl1, (B,), 3, S0 + 1, dtype=jnp.int32)
    len1 = jax.random.randint(kl2, (B,), 3, S1 + 1, dtype=jnp.int32)

    model = MultiSrcNMTModel(params)
    dec_out, attns = model.forward([src0, src1], tgt, [len0, len1])
    dec_out = jax.block_until_ready(dec_out)
    a0 = jax.block_until_ready(attns['std_0'])
    a1 = jax.block_until_ready(attns['std_1'])

    # Shape contract from the PyTorch docstring
    assert dec_out.shape == (T_IN - 1, B, H)
    assert a0.shape == (T_IN - 1, B, S0)
    assert a1.shape == (T_IN - 1, B, S1)

    # Numerical check against a pure-JAX reference (MXU accumulation order and
    # the approximate EUP reciprocal in the softmax differ slightly from XLA).
    ref_dec, ref_attns = reference_forward(params, [src0, src1], tgt, [len0, len1])
    assert jnp.allclose(dec_out, ref_dec, atol=2e-2, rtol=2e-2)
    assert jnp.allclose(a0, ref_attns['std_0'], atol=2e-2, rtol=2e-2)
    assert jnp.allclose(a1, ref_attns['std_1'], atol=2e-2, rtol=2e-2)
    # attention rows must sum to ~1 (approx reciprocal -> slightly loose tol)
    assert jnp.allclose(jnp.sum(a0, axis=-1), 1.0, atol=5e-3)
    assert jnp.allclose(jnp.sum(a1, axis=-1), 1.0, atol=5e-3)

    print("KERNEL_OK")
</pallas_src>

<mosaic_0001>
module attributes {stable_mosaic.version = 11 : i64} {
  func.func @recurrent_kernel(%arg0: memref<8x128xf32, #tpu.memory_space<vmem>>, %arg1: memref<8x8x128xf32, #tpu.memory_space<vmem>>, %arg2: memref<8x8x128xf32, #tpu.memory_space<vmem>>, %arg3: memref<8x8x128xf32, #tpu.memory_space<vmem>>, %arg4: memref<128x128xf32, #tpu.memory_space<vmem>>, %arg5: memref<128x128xf32, #tpu.memory_space<vmem>>, %arg6: memref<1x128xf32, #tpu.memory_space<vmem>>, %arg7: memref<128x128xf32, #tpu.memory_space<vmem>>, %arg8: memref<128x128xf32, #tpu.memory_space<vmem>>, %arg9: memref<1x128xf32, #tpu.memory_space<vmem>>, %arg10: memref<128x128xf32, #tpu.memory_space<vmem>>, %arg11: memref<128x128xf32, #tpu.memory_space<vmem>>, %arg12: memref<1x128xf32, #tpu.memory_space<vmem>>, %arg13: memref<8x8x128xf32, #tpu.memory_space<vmem>>, %arg14: memref<8x8x128xf32, #tpu.memory_space<vmem>>, %arg15: memref<8x8x128xf32, #tpu.memory_space<vmem>>) attributes {dimension_semantics = [], scalar_prefetch = 0 : i64, scratch_operands = 0 : i64, tpu.core_type = #tpu.core_type<tc>} {
    %cst = arith.constant 0.000000e+00 : f32
    %0 = vector.broadcast %cst : f32 to vector<8x128xf32>
    %c0 = arith.constant 0 : index
    %c0_0 = arith.constant 0 : index
    %c0_1 = arith.constant 0 : index
    %1 = vector.load %arg1[%c0, %c0_0, %c0_1] : memref<8x8x128xf32, #tpu.memory_space<vmem>>, vector<8x8x128xf32>
    %2 = vector.shape_cast %1 : vector<8x8x128xf32> to vector<64x128xf32>
    %c0_2 = arith.constant 0 : index
    %c0_3 = arith.constant 0 : index
    %3 = vector.load %arg4[%c0_2, %c0_3] : memref<128x128xf32, #tpu.memory_space<vmem>>, vector<128x128xf32>
    %cst_4 = arith.constant dense<0.000000e+00> : vector<64x128xf32>
    %4 = tpu.matmul %2, %3, %cst_4 {dimension_numbers = #tpu.dot_dimension_numbers<[1], [0], [0], [1], [0, 0, 1, 1], [], []>} : vector<64x128xf32>, vector<128x128xf32>, vector<64x128xf32> -> vector<64x128xf32>
    %c0_5 = arith.constant 0 : index
    %c0_6 = arith.constant 0 : index
    %5 = vector.load %arg6[%c0_5, %c0_6] : memref<1x128xf32, #tpu.memory_space<vmem>>, vector<1x128xf32>
    %6 = vector.broadcast %5 : vector<1x128xf32> to vector<64x128xf32>
    %7 = arith.addf %4, %6 : vector<64x128xf32>
    %8 = vector.shape_cast %7 : vector<64x128xf32> to vector<8x8x128xf32>
    %c0_7 = arith.constant 0 : index
    %c0_8 = arith.constant 0 : index
    %9 = vector.load %arg5[%c0_7, %c0_8] : memref<128x128xf32, #tpu.memory_space<vmem>>, vector<128x128xf32>
    %10 = vector.extract_strided_slice %8 {offsets = [0, 0, 0], sizes = [1, 8, 128], strides = [1, 1, 1]} : vector<8x8x128xf32> to vector<1x8x128xf32>
    %11 = vector.shape_cast %10 : vector<1x8x128xf32> to vector<8x128xf32>
    %cst_9 = arith.constant dense<0.000000e+00> : vector<8x128xf32>
    %12 = tpu.matmul %0, %9, %cst_9 {dimension_numbers = #tpu.dot_dimension_numbers<[1], [0], [0], [1], [0, 0, 1, 1], [], []>} : vector<8x128xf32>, vector<128x128xf32>, vector<8x128xf32> -> vector<8x128xf32>
    %13 = arith.addf %11, %12 : vector<8x128xf32>
    %14 = math.tanh %13 : vector<8x128xf32>
    %c0_10 = arith.constant 0 : index
    %c0_11 = arith.constant 0 : index
    %c0_12 = arith.constant 0 : index
    %15 = vector.load %arg13[%c0_10, %c0_11, %c0_12] : memref<8x8x128xf32, #tpu.memory_space<vmem>>, vector<1x8x128xf32>
    %16 = vector.shape_cast %15 : vector<1x8x128xf32> to vector<8x128xf32>
    %17 = vector.shape_cast %14 : vector<8x128xf32> to vector<1x8x128xf32>
    tpu.vector_store %arg13[%c0_10, %c0_11, %c0_12], %17 {strides = array<i32>} : memref<8x8x128xf32, #tpu.memory_space<vmem>>, vector<1x8x128xf32>,
    %18 = vector.extract_strided_slice %8 {offsets = [1, 0, 0], sizes = [1, 8, 128], strides = [1, 1, 1]} : vector<8x8x128xf32> to vector<1x8x128xf32>
    %19 = vector.shape_cast %18 : vector<1x8x128xf32> to vector<8x128xf32>
    %cst_13 = arith.constant dense<0.000000e+00> : vector<8x128xf32>
    %20 = tpu.matmul %14, %9, %cst_13 {dimension_numbers = #tpu.dot_dimension_numbers<[1], [0], [0], [1], [0, 0, 1, 1], [], []>} : vector<8x128xf32>, vector<128x128xf32>, vector<8x128xf32> -> vector<8x128xf32>
    %21 = arith.addf %19, %20 : vector<8x128xf32>
    %22 = math.tanh %21 : vector<8x128xf32>
    %c1 = arith.constant 1 : index
    %c0_14 = arith.constant 0 : index
    %c0_15 = arith.constant 0 : index
    %23 = vector.load %arg13[%c1, %c0_14, %c0_15] : memref<8x8x128xf32, #tpu.memory_space<vmem>>, vector<1x8x128xf32>
    %24 = vector.shape_cast %23 : vector<1x8x128xf32> to vector<8x128xf32>
    %25 = vector.shape_cast %22 : vector<8x128xf32> to vector<1x8x128xf32>
    tpu.vector_store %arg13[%c1, %c0_14, %c0_15], %25 {strides = array<i32>} : memref<8x8x128xf32, #tpu.memory_space<vmem>>, vector<1x8x128xf32>,
    %26 = vector.extract_strided_slice %8 {offsets = [2, 0, 0], sizes = [1, 8, 128], strides = [1, 1, 1]} : vector<8x8x128xf32> to vector<1x8x128xf32>
    %27 = vector.shape_cast %26 : vector<1x8x128xf32> to vector<8x128xf32>
    %cst_16 = arith.constant dense<0.000000e+00> : vector<8x128xf32>
    %28 = tpu.matmul %22, %9, %cst_16 {dimension_numbers = #tpu.dot_dimension_numbers<[1], [0], [0], [1], [0, 0, 1, 1], [], []>} : vector<8x128xf32>, vector<128x128xf32>, vector<8x128xf32> -> vector<8x128xf32>
    %29 = arith.addf %27, %28 : vector<8x128xf32>
    %30 = math.tanh %29 : vector<8x128xf32>
    %c2 = arith.constant 2 : index
    %c0_17 = arith.constant 0 : index
    %c0_18 = arith.constant 0 : index
    %31 = vector.load %arg13[%c2, %c0_17, %c0_18] : memref<8x8x128xf32, #tpu.memory_space<vmem>>, vector<1x8x128xf32>
    %32 = vector.shape_cast %31 : vector<1x8x128xf32> to vector<8x128xf32>
    %33 = vector.shape_cast %30 : vector<8x128xf32> to vector<1x8x128xf32>
    tpu.vector_store %arg13[%c2, %c0_17, %c0_18], %33 {strides = array<i32>} : memref<8x8x128xf32, #tpu.memory_space<vmem>>, vector<1x8x128xf32>,
    %34 = vector.extract_strided_slice %8 {offsets = [3, 0, 0], sizes = [1, 8, 128], strides = [1, 1, 1]} : vector<8x8x128xf32> to vector<1x8x128xf32>
    %35 = vector.shape_cast %34 : vector<1x8x128xf32> to vector<8x128xf32>
    %cst_19 = arith.constant dense<0.000000e+00> : vector<8x128xf32>
    %36 = tpu.matmul %30, %9, %cst_19 {dimension_numbers = #tpu.dot_dimension_numbers<[1], [0], [0], [1], [0, 0, 1, 1], [], []>} : vector<8x128xf32>, vector<128x128xf32>, vector<8x128xf32> -> vector<8x128xf32>
    %37 = arith.addf %35, %36 : vector<8x128xf32>
    %38 = math.tanh %37 : vector<8x128xf32>
    %c3 = arith.constant 3 : index
    %c0_20 = arith.constant 0 : index
    %c0_21 = arith.constant 0 : index
    %39 = vector.load %arg13[%c3, %c0_20, %c0_21] : memref<8x8x128xf32, #tpu.memory_space<vmem>>, vector<1x8x128xf32>
    %40 = vector.shape_cast %39 : vector<1x8x128xf32> to vector<8x128xf32>
    %41 = vector.shape_cast %38 : vector<8x128xf32> to vector<1x8x128xf32>
    tpu.vector_store %arg13[%c3, %c0_20, %c0_21], %41 {strides = array<i32>} : memref<8x8x128xf32, #tpu.memory_space<vmem>>, vector<1x8x128xf32>,
    %42 = vector.extract_strided_slice %8 {offsets = [4, 0, 0], sizes = [1, 8, 128], strides = [1, 1, 1]} : vector<8x8x128xf32> to vector<1x8x128xf32>
    %43 = vector.shape_cast %42 : vector<1x8x128xf32> to vector<8x128xf32>
    %cst_22 = arith.constant dense<0.000000e+00> : vector<8x128xf32>
    %44 = tpu.matmul %38, %9, %cst_22 {dimension_numbers = #tpu.dot_dimension_numbers<[1], [0], [0], [1], [0, 0, 1, 1], [], []>} : vector<8x128xf32>, vector<128x128xf32>, vector<8x128xf32> -> vector<8x128xf32>
    %45 = arith.addf %43, %44 : vector<8x128xf32>
    %46 = math.tanh %45 : vector<8x128xf32>
    %c4 = arith.constant 4 : index
    %c0_23 = arith.constant 0 : index
    %c0_24 = arith.constant 0 : index
    %47 = vector.load %arg13[%c4, %c0_23, %c0_24] : memref<8x8x128xf32, #tpu.memory_space<vmem>>, vector<1x8x128xf32>
    %48 = vector.shape_cast %47 : vector<1x8x128xf32> to vector<8x128xf32>
    %49 = vector.shape_cast %46 : vector<8x128xf32> to vector<1x8x128xf32>
    tpu.vector_store %arg13[%c4, %c0_23, %c0_24], %49 {strides = array<i32>} : memref<8x8x128xf32, #tpu.memory_space<vmem>>, vector<1x8x128xf32>,
    %50 = vector.extract_strided_slice %8 {offsets = [5, 0, 0], sizes = [1, 8, 128], strides = [1, 1, 1]} : vector<8x8x128xf32> to vector<1x8x128xf32>
    %51 = vector.shape_cast %50 : vector<1x8x128xf32> to vector<8x128xf32>
    %cst_25 = arith.constant dense<0.000000e+00> : vector<8x128xf32>
    %52 = tpu.matmul %46, %9, %cst_25 {dimension_numbers = #tpu.dot_dimension_numbers<[1], [0], [0], [1], [0, 0, 1, 1], [], []>} : vector<8x128xf32>, vector<128x128xf32>, vector<8x128xf32> -> vector<8x128xf32>
    %53 = arith.addf %51, %52 : vector<8x128xf32>
    %54 = math.tanh %53 : vector<8x128xf32>
    %c5 = arith.constant 5 : index
    %c0_26 = arith.constant 0 : index
    %c0_27 = arith.constant 0 : index
    %55 = vector.load %arg13[%c5, %c0_26, %c0_27] : memref<8x8x128xf32, #tpu.memory_space<vmem>>, vector<1x8x128xf32>
    %56 = vector.shape_cast %55 : vector<1x8x128xf32> to vector<8x128xf32>
    %57 = vector.shape_cast %54 : vector<8x128xf32> to vector<1x8x128xf32>
    tpu.vector_store %arg13[%c5, %c0_26, %c0_27], %57 {strides = array<i32>} : memref<8x8x128xf32, #tpu.memory_space<vmem>>, vector<1x8x128xf32>,
    %58 = vector.extract_strided_slice %8 {offsets = [6, 0, 0], sizes = [1, 8, 128], strides = [1, 1, 1]} : vector<8x8x128xf32> to vector<1x8x128xf32>
    %59 = vector.shape_cast %58 : vector<1x8x128xf32> to vector<8x128xf32>
    %cst_28 = arith.constant dense<0.000000e+00> : vector<8x128xf32>
    %60 = tpu.matmul %54, %9, %cst_28 {dimension_numbers = #tpu.dot_dimension_numbers<[1], [0], [0], [1], [0, 0, 1, 1], [], []>} : vector<8x128xf32>, vector<128x128xf32>, vector<8x128xf32> -> vector<8x128xf32>
    %61 = arith.addf %59, %60 : vector<8x128xf32>
    %62 = math.tanh %61 : vector<8x128xf32>
    %c6 = arith.constant 6 : index
    %c0_29 = arith.constant 0 : index
    %c0_30 = arith.constant 0 : index
    %63 = vector.load %arg13[%c6, %c0_29, %c0_30] : memref<8x8x128xf32, #tpu.memory_space<vmem>>, vector<1x8x128xf32>
    %64 = vector.shape_cast %63 : vector<1x8x128xf32> to vector<8x128xf32>
    %65 = vector.shape_cast %62 : vector<8x128xf32> to vector<1x8x128xf32>
    tpu.vector_store %arg13[%c6, %c0_29, %c0_30], %65 {strides = array<i32>} : memref<8x8x128xf32, #tpu.memory_space<vmem>>, vector<1x8x128xf32>,
    %66 = vector.extract_strided_slice %8 {offsets = [7, 0, 0], sizes = [1, 8, 128], strides = [1, 1, 1]} : vector<8x8x128xf32> to vector<1x8x128xf32>
    %67 = vector.shape_cast %66 : vector<1x8x128xf32> to vector<8x128xf32>
    %cst_31 = arith.constant dense<0.000000e+00> : vector<8x128xf32>
    %68 = tpu.matmul %62, %9, %cst_31 {dimension_numbers = #tpu.dot_dimension_numbers<[1], [0], [0], [1], [0, 0, 1, 1], [], []>} : vector<8x128xf32>, vector<128x128xf32>, vector<8x128xf32> -> vector<8x128xf32>
    %69 = arith.addf %67, %68 : vector<8x128xf32>
    %70 = math.tanh %69 : vector<8x128xf32>
    %c7 = arith.constant 7 : index
    %c0_32 = arith.constant 0 : index
    %c0_33 = arith.constant 0 : index
    %71 = vector.load %arg13[%c7, %c0_32, %c0_33] : memref<8x8x128xf32, #tpu.memory_space<vmem>>, vector<1x8x128xf32>
    %72 = vector.shape_cast %71 : vector<1x8x128xf32> to vector<8x128xf32>
    %73 = vector.shape_cast %70 : vector<8x128xf32> to vector<1x8x128xf32>
    tpu.vector_store %arg13[%c7, %c0_32, %c0_33], %73 {strides = array<i32>} : memref<8x8x128xf32, #tpu.memory_space<vmem>>, vector<1x8x128xf32>,
    %c0_34 = arith.constant 0 : index
    %c0_35 = arith.constant 0 : index
    %c0_36 = arith.constant 0 : index
    %74 = vector.load %arg2[%c0_34, %c0_35, %c0_36] : memref<8x8x128xf32, #tpu.memory_space<vmem>>, vector<8x8x128xf32>
    %75 = vector.shape_cast %74 : vector<8x8x128xf32> to vector<64x128xf32>
    %c0_37 = arith.constant 0 : index
    %c0_38 = arith.constant 0 : index
    %76 = vector.load %arg7[%c0_37, %c0_38] : memref<128x128xf32, #tpu.memory_space<vmem>>, vector<128x128xf32>
    %cst_39 = arith.constant dense<0.000000e+00> : vector<64x128xf32>
    %77 = tpu.matmul %75, %76, %cst_39 {dimension_numbers = #tpu.dot_dimension_numbers<[1], [0], [0], [1], [0, 0, 1, 1], [], []>} : vector<64x128xf32>, vector<128x128xf32>, vector<64x128xf32> -> vector<64x128xf32>
    %c0_40 = arith.constant 0 : index
    %c0_41 = arith.constant 0 : index
    %78 = vector.load %arg9[%c0_40, %c0_41] : memref<1x128xf32, #tpu.memory_space<vmem>>, vector<1x128xf32>
    %79 = vector.broadcast %78 : vector<1x128xf32> to vector<64x128xf32>
    %80 = arith.addf %77, %79 : vector<64x128xf32>
    %81 = vector.shape_cast %80 : vector<64x128xf32> to vector<8x8x128xf32>
    %c0_42 = arith.constant 0 : index
    %c0_43 = arith.constant 0 : index
    %82 = vector.load %arg8[%c0_42, %c0_43] : memref<128x128xf32, #tpu.memory_space<vmem>>, vector<128x128xf32>
    %83 = vector.extract_strided_slice %81 {offsets = [0, 0, 0], sizes = [1, 8, 128], strides = [1, 1, 1]} : vector<8x8x128xf32> to vector<1x8x128xf32>
    %84 = vector.shape_cast %83 : vector<1x8x128xf32> to vector<8x128xf32>
    %cst_44 = arith.constant dense<0.000000e+00> : vector<8x128xf32>
    %85 = tpu.matmul %0, %82, %cst_44 {dimension_numbers = #tpu.dot_dimension_numbers<[1], [0], [0], [1], [0, 0, 1, 1], [], []>} : vector<8x128xf32>, vector<128x128xf32>, vector<8x128xf32> -> vector<8x128xf32>
    %86 = arith.addf %84, %85 : vector<8x128xf32>
    %87 = math.tanh %86 : vector<8x128xf32>
    %c0_45 = arith.constant 0 : index
    %c0_46 = arith.constant 0 : index
    %c0_47 = arith.constant 0 : index
    %88 = vector.load %arg14[%c0_45, %c0_46, %c0_47] : memref<8x8x128xf32, #tpu.memory_space<vmem>>, vector<1x8x128xf32>
    %89 = vector.shape_cast %88 : vector<1x8x128xf32> to vector<8x128xf32>
    %90 = vector.shape_cast %87 : vector<8x128xf32> to vector<1x8x128xf32>
    tpu.vector_store %arg14[%c0_45, %c0_46, %c0_47], %90 {strides = array<i32>} : memref<8x8x128xf32, #tpu.memory_space<vmem>>, vector<1x8x128xf32>,
    %91 = vector.extract_strided_slice %81 {offsets = [1, 0, 0], sizes = [1, 8, 128], strides = [1, 1, 1]} : vector<8x8x128xf32> to vector<1x8x128xf32>
    %92 = vector.shape_cast %91 : vector<1x8x128xf32> to vector<8x128xf32>
    %cst_48 = arith.constant dense<0.000000e+00> : vector<8x128xf32>
    %93 = tpu.matmul %87, %82, %cst_48 {dimension_numbers = #tpu.dot_dimension_numbers<[1], [0], [0], [1], [0, 0, 1, 1], [], []>} : vector<8x128xf32>, vector<128x128xf32>, vector<8x128xf32> -> vector<8x128xf32>
    %94 = arith.addf %92, %93 : vector<8x128xf32>
    %95 = math.tanh %94 : vector<8x128xf32>
    %c1_49 = arith.constant 1 : index
    %c0_50 = arith.constant 0 : index
    %c0_51 = arith.constant 0 : index
    %96 = vector.load %arg14[%c1_49, %c0_50, %c0_51] : memref<8x8x128xf32, #tpu.memory_space<vmem>>, vector<1x8x128xf32>
    %97 = vector.shape_cast %96 : vector<1x8x128xf32> to vector<8x128xf32>
    %98 = vector.shape_cast %95 : vector<8x128xf32> to vector<1x8x128xf32>
    tpu.vector_store %arg14[%c1_49, %c0_50, %c0_51], %98 {strides = array<i32>} : memref<8x8x128xf32, #tpu.memory_space<vmem>>, vector<1x8x128xf32>,
    %99 = vector.extract_strided_slice %81 {offsets = [2, 0, 0], sizes = [1, 8, 128], strides = [1, 1, 1]} : vector<8x8x128xf32> to vector<1x8x128xf32>
    %100 = vector.shape_cast %99 : vector<1x8x128xf32> to vector<8x128xf32>
    %cst_52 = arith.constant dense<0.000000e+00> : vector<8x128xf32>
    %101 = tpu.matmul %95, %82, %cst_52 {dimension_numbers = #tpu.dot_dimension_numbers<[1], [0], [0], [1], [0, 0, 1, 1], [], []>} : vector<8x128xf32>, vector<128x128xf32>, vector<8x128xf32> -> vector<8x128xf32>
    %102 = arith.addf %100, %101 : vector<8x128xf32>
    %103 = math.tanh %102 : vector<8x128xf32>
    %c2_53 = arith.constant 2 : index
    %c0_54 = arith.constant 0 : index
    %c0_55 = arith.constant 0 : index
    %104 = vector.load %arg14[%c2_53, %c0_54, %c0_55] : memref<8x8x128xf32, #tpu.memory_space<vmem>>, vector<1x8x128xf32>
    %105 = vector.shape_cast %104 : vector<1x8x128xf32> to vector<8x128xf32>
    %106 = vector.shape_cast %103 : vector<8x128xf32> to vector<1x8x128xf32>
    tpu.vector_store %arg14[%c2_53, %c0_54, %c0_55], %106 {strides = array<i32>} : memref<8x8x128xf32, #tpu.memory_space<vmem>>, vector<1x8x128xf32>,
    %107 = vector.extract_strided_slice %81 {offsets = [3, 0, 0], sizes = [1, 8, 128], strides = [1, 1, 1]} : vector<8x8x128xf32> to vector<1x8x128xf32>
    %108 = vector.shape_cast %107 : vector<1x8x128xf32> to vector<8x128xf32>
    %cst_56 = arith.constant dense<0.000000e+00> : vector<8x128xf32>
    %109 = tpu.matmul %103, %82, %cst_56 {dimension_numbers = #tpu.dot_dimension_numbers<[1], [0], [0], [1], [0, 0, 1, 1], [], []>} : vector<8x128xf32>, vector<128x128xf32>, vector<8x128xf32> -> vector<8x128xf32>
    %110 = arith.addf %108, %109 : vector<8x128xf32>
    %111 = math.tanh %110 : vector<8x128xf32>
    %c3_57 = arith.constant 3 : index
    %c0_58 = arith.constant 0 : index
    %c0_59 = arith.constant 0 : index
    %112 = vector.load %arg14[%c3_57, %c0_58, %c0_59] : memref<8x8x128xf32, #tpu.memory_space<vmem>>, vector<1x8x128xf32>
    %113 = vector.shape_cast %112 : vector<1x8x128xf32> to vector<8x128xf32>
    %114 = vector.shape_cast %111 : vector<8x128xf32> to vector<1x8x128xf32>
    tpu.vector_store %arg14[%c3_57, %c0_58, %c0_59], %114 {strides = array<i32>} : memref<8x8x128xf32, #tpu.memory_space<vmem>>, vector<1x8x128xf32>,
    %115 = vector.extract_strided_slice %81 {offsets = [4, 0, 0], sizes = [1, 8, 128], strides = [1, 1, 1]} : vector<8x8x128xf32> to vector<1x8x128xf32>
    %116 = vector.shape_cast %115 : vector<1x8x128xf32> to vector<8x128xf32>
    %cst_60 = arith.constant dense<0.000000e+00> : vector<8x128xf32>
    %117 = tpu.matmul %111, %82, %cst_60 {dimension_numbers = #tpu.dot_dimension_numbers<[1], [0], [0], [1], [0, 0, 1, 1], [], []>} : vector<8x128xf32>, vector<128x128xf32>, vector<8x128xf32> -> vector<8x128xf32>
    %118 = arith.addf %116, %117 : vector<8x128xf32>
    %119 = math.tanh %118 : vector<8x128xf32>
    %c4_61 = arith.constant 4 : index
    %c0_62 = arith.constant 0 : index
    %c0_63 = arith.constant 0 : index
    %120 = vector.load %arg14[%c4_61, %c0_62, %c0_63] : memref<8x8x128xf32, #tpu.memory_space<vmem>>, vector<1x8x128xf32>
    %121 = vector.shape_cast %120 : vector<1x8x128xf32> to vector<8x128xf32>
    %122 = vector.shape_cast %119 : vector<8x128xf32> to vector<1x8x128xf32>
    tpu.vector_store %arg14[%c4_61, %c0_62, %c0_63], %122 {strides = array<i32>} : memref<8x8x128xf32, #tpu.memory_space<vmem>>, vector<1x8x128xf32>,
    %123 = vector.extract_strided_slice %81 {offsets = [5, 0, 0], sizes = [1, 8, 128], strides = [1, 1, 1]} : vector<8x8x128xf32> to vector<1x8x128xf32>
    %124 = vector.shape_cast %123 : vector<1x8x128xf32> to vector<8x128xf32>
    %cst_64 = arith.constant dense<0.000000e+00> : vector<8x128xf32>
    %125 = tpu.matmul %119, %82, %cst_64 {dimension_numbers = #tpu.dot_dimension_numbers<[1], [0], [0], [1], [0, 0, 1, 1], [], []>} : vector<8x128xf32>, vector<128x128xf32>, vector<8x128xf32> -> vector<8x128xf32>
    %126 = arith.addf %124, %125 : vector<8x128xf32>
    %127 = math.tanh %126 : vector<8x128xf32>
    %c5_65 = arith.constant 5 : index
    %c0_66 = arith.constant 0 : index
    %c0_67 = arith.constant 0 : index
    %128 = vector.load %arg14[%c5_65, %c0_66, %c0_67] : memref<8x8x128xf32, #tpu.memory_space<vmem>>, vector<1x8x128xf32>
    %129 = vector.shape_cast %128 : vector<1x8x128xf32> to vector<8x128xf32>
    %130 = vector.shape_cast %127 : vector<8x128xf32> to vector<1x8x128xf32>
    tpu.vector_store %arg14[%c5_65, %c0_66, %c0_67], %130 {strides = array<i32>} : memref<8x8x128xf32, #tpu.memory_space<vmem>>, vector<1x8x128xf32>,
    %131 = vector.extract_strided_slice %81 {offsets = [6, 0, 0], sizes = [1, 8, 128], strides = [1, 1, 1]} : vector<8x8x128xf32> to vector<1x8x128xf32>
    %132 = vector.shape_cast %131 : vector<1x8x128xf32> to vector<8x128xf32>
    %cst_68 = arith.constant dense<0.000000e+00> : vector<8x128xf32>
    %133 = tpu.matmul %127, %82, %cst_68 {dimension_numbers = #tpu.dot_dimension_numbers<[1], [0], [0], [1], [0, 0, 1, 1], [], []>} : vector<8x128xf32>, vector<128x128xf32>, vector<8x128xf32> -> vector<8x128xf32>
    %134 = arith.addf %132, %133 : vector<8x128xf32>
    %135 = math.tanh %134 : vector<8x128xf32>
    %c6_69 = arith.constant 6 : index
    %c0_70 = arith.constant 0 : index
    %c0_71 = arith.constant 0 : index
    %136 = vector.load %arg14[%c6_69, %c0_70, %c0_71] : memref<8x8x128xf32, #tpu.memory_space<vmem>>, vector<1x8x128xf32>
    %137 = vector.shape_cast %136 : vector<1x8x128xf32> to vector<8x128xf32>
    %138 = vector.shape_cast %135 : vector<8x128xf32> to vector<1x8x128xf32>
    tpu.vector_store %arg14[%c6_69, %c0_70, %c0_71], %138 {strides = array<i32>} : memref<8x8x128xf32, #tpu.memory_space<vmem>>, vector<1x8x128xf32>,
    %139 = vector.extract_strided_slice %81 {offsets = [7, 0, 0], sizes = [1, 8, 128], strides = [1, 1, 1]} : vector<8x8x128xf32> to vector<1x8x128xf32>
    %140 = vector.shape_cast %139 : vector<1x8x128xf32> to vector<8x128xf32>
    %cst_72 = arith.constant dense<0.000000e+00> : vector<8x128xf32>
    %141 = tpu.matmul %135, %82, %cst_72 {dimension_numbers = #tpu.dot_dimension_numbers<[1], [0], [0], [1], [0, 0, 1, 1], [], []>} : vector<8x128xf32>, vector<128x128xf32>, vector<8x128xf32> -> vector<8x128xf32>
    %142 = arith.addf %140, %141 : vector<8x128xf32>
    %143 = math.tanh %142 : vector<8x128xf32>
    %c7_73 = arith.constant 7 : index
    %c0_74 = arith.constant 0 : index
    %c0_75 = arith.constant 0 : index
    %144 = vector.load %arg14[%c7_73, %c0_74, %c0_75] : memref<8x8x128xf32, #tpu.memory_space<vmem>>, vector<1x8x128xf32>
    %145 = vector.shape_cast %144 : vector<1x8x128xf32> to vector<8x128xf32>
    %146 = vector.shape_cast %143 : vector<8x128xf32> to vector<1x8x128xf32>
    tpu.vector_store %arg14[%c7_73, %c0_74, %c0_75], %146 {strides = array<i32>} : memref<8x8x128xf32, #tpu.memory_space<vmem>>, vector<1x8x128xf32>,
    %147 = arith.addf %70, %143 : vector<8x128xf32>
    %cst_76 = arith.constant 5.000000e-01 : f32
    %148 = vector.broadcast %cst_76 : f32 to vector<8x128xf32>
    %149 = arith.mulf %147, %148 : vector<8x128xf32>
    %c0_77 = arith.constant 0 : index
    %c0_78 = arith.constant 0 : index
    %c0_79 = arith.constant 0 : index
    %150 = vector.load %arg3[%c0_77, %c0_78, %c0_79] : memref<8x8x128xf32, #tpu.memory_space<vmem>>, vector<8x8x128xf32>
    %151 = vector.shape_cast %150 : vector<8x8x128xf32> to vector<64x128xf32>
    %c0_80 = arith.constant 0 : index
    %c0_81 = arith.constant 0 : index
    %152 = vector.load %arg10[%c0_80, %c0_81] : memref<128x128xf32, #tpu.memory_space<vmem>>, vector<128x128xf32>
    %cst_82 = arith.constant dense<0.000000e+00> : vector<64x128xf32>
    %153 = tpu.matmul %151, %152, %cst_82 {dimension_numbers = #tpu.dot_dimension_numbers<[1], [0], [0], [1], [0, 0, 1, 1], [], []>} : vector<64x128xf32>, vector<128x128xf32>, vector<64x128xf32> -> vector<64x128xf32>
    %c0_83 = arith.constant 0 : index
    %c0_84 = arith.constant 0 : index
    %154 = vector.load %arg12[%c0_83, %c0_84] : memref<1x128xf32, #tpu.memory_space<vmem>>, vector<1x128xf32>
    %155 = vector.broadcast %154 : vector<1x128xf32> to vector<64x128xf32>
    %156 = arith.addf %153, %155 : vector<64x128xf32>
    %157 = vector.shape_cast %156 : vector<64x128xf32> to vector<8x8x128xf32>
    %c0_85 = arith.constant 0 : index
    %c0_86 = arith.constant 0 : index
    %158 = vector.load %arg11[%c0_85, %c0_86] : memref<128x128xf32, #tpu.memory_space<vmem>>, vector<128x128xf32>
    %159 = vector.extract_strided_slice %157 {offsets = [0, 0, 0], sizes = [1, 8, 128], strides = [1, 1, 1]} : vector<8x8x128xf32> to vector<1x8x128xf32>
    %160 = vector.shape_cast %159 : vector<1x8x128xf32> to vector<8x128xf32>
    %cst_87 = arith.constant dense<0.000000e+00> : vector<8x128xf32>
    %161 = tpu.matmul %149, %158, %cst_87 {dimension_numbers = #tpu.dot_dimension_numbers<[1], [0], [0], [1], [0, 0, 1, 1], [], []>} : vector<8x128xf32>, vector<128x128xf32>, vector<8x128xf32> -> vector<8x128xf32>
    %162 = arith.addf %160, %161 : vector<8x128xf32>
    %163 = math.tanh %162 : vector<8x128xf32>
    %c0_88 = arith.constant 0 : index
    %c0_89 = arith.constant 0 : index
    %c0_90 = arith.constant 0 : index
    %164 = vector.load %arg15[%c0_88, %c0_89, %c0_90] : memref<8x8x128xf32, #tpu.memory_space<vmem>>, vector<1x8x128xf32>
    %165 = vector.shape_cast %164 : vector<1x8x128xf32> to vector<8x128xf32>
    %166 = vector.shape_cast %163 : vector<8x128xf32> to vector<1x8x128xf32>
    tpu.vector_store %arg15[%c0_88, %c0_89, %c0_90], %166 {strides = array<i32>} : memref<8x8x128xf32, #tpu.memory_space<vmem>>, vector<1x8x128xf32>,
    %167 = vector.extract_strided_slice %157 {offsets = [1, 0, 0], sizes = [1, 8, 128], strides = [1, 1, 1]} : vector<8x8x128xf32> to vector<1x8x128xf32>
    %168 = vector.shape_cast %167 : vector<1x8x128xf32> to vector<8x128xf32>
    %cst_91 = arith.constant dense<0.000000e+00> : vector<8x128xf32>
    %169 = tpu.matmul %163, %158, %cst_91 {dimension_numbers = #tpu.dot_dimension_numbers<[1], [0], [0], [1], [0, 0, 1, 1], [], []>} : vector<8x128xf32>, vector<128x128xf32>, vector<8x128xf32> -> vector<8x128xf32>
    %170 = arith.addf %168, %169 : vector<8x128xf32>
    %171 = math.tanh %170 : vector<8x128xf32>
    %c1_92 = arith.constant 1 : index
    %c0_93 = arith.constant 0 : index
    %c0_94 = arith.constant 0 : index
    %172 = vector.load %arg15[%c1_92, %c0_93, %c0_94] : memref<8x8x128xf32, #tpu.memory_space<vmem>>, vector<1x8x128xf32>
    %173 = vector.shape_cast %172 : vector<1x8x128xf32> to vector<8x128xf32>
    %174 = vector.shape_cast %171 : vector<8x128xf32> to vector<1x8x128xf32>
    tpu.vector_store %arg15[%c1_92, %c0_93, %c0_94], %174 {strides = array<i32>} : memref<8x8x128xf32, #tpu.memory_space<vmem>>, vector<1x8x128xf32>,
    %175 = vector.extract_strided_slice %157 {offsets = [2, 0, 0], sizes = [1, 8, 128], strides = [1, 1, 1]} : vector<8x8x128xf32> to vector<1x8x128xf32>
    %176 = vector.shape_cast %175 : vector<1x8x128xf32> to vector<8x128xf32>
    %cst_95 = arith.constant dense<0.000000e+00> : vector<8x128xf32>
    %177 = tpu.matmul %171, %158, %cst_95 {dimension_numbers = #tpu.dot_dimension_numbers<[1], [0], [0], [1], [0, 0, 1, 1], [], []>} : vector<8x128xf32>, vector<128x128xf32>, vector<8x128xf32> -> vector<8x128xf32>
    %178 = arith.addf %176, %177 : vector<8x128xf32>
    %179 = math.tanh %178 : vector<8x128xf32>
    %c2_96 = arith.constant 2 : index
    %c0_97 = arith.constant 0 : index
    %c0_98 = arith.constant 0 : index
    %180 = vector.load %arg15[%c2_96, %c0_97, %c0_98] : memref<8x8x128xf32, #tpu.memory_space<vmem>>, vector<1x8x128xf32>
    %181 = vector.shape_cast %180 : vector<1x8x128xf32> to vector<8x128xf32>
    %182 = vector.shape_cast %179 : vector<8x128xf32> to vector<1x8x128xf32>
    tpu.vector_store %arg15[%c2_96, %c0_97, %c0_98], %182 {strides = array<i32>} : memref<8x8x128xf32, #tpu.memory_space<vmem>>, vector<1x8x128xf32>,
    %183 = vector.extract_strided_slice %157 {offsets = [3, 0, 0], sizes = [1, 8, 128], strides = [1, 1, 1]} : vector<8x8x128xf32> to vector<1x8x128xf32>
    %184 = vector.shape_cast %183 : vector<1x8x128xf32> to vector<8x128xf32>
    %cst_99 = arith.constant dense<0.000000e+00> : vector<8x128xf32>
    %185 = tpu.matmul %179, %158, %cst_99 {dimension_numbers = #tpu.dot_dimension_numbers<[1], [0], [0], [1], [0, 0, 1, 1], [], []>} : vector<8x128xf32>, vector<128x128xf32>, vector<8x128xf32> -> vector<8x128xf32>
    %186 = arith.addf %184, %185 : vector<8x128xf32>
    %187 = math.tanh %186 : vector<8x128xf32>
    %c3_100 = arith.constant 3 : index
    %c0_101 = arith.constant 0 : index
    %c0_102 = arith.constant 0 : index
    %188 = vector.load %arg15[%c3_100, %c0_101, %c0_102] : memref<8x8x128xf32, #tpu.memory_space<vmem>>, vector<1x8x128xf32>
    %189 = vector.shape_cast %188 : vector<1x8x128xf32> to vector<8x128xf32>
    %190 = vector.shape_cast %187 : vector<8x128xf32> to vector<1x8x128xf32>
    tpu.vector_store %arg15[%c3_100, %c0_101, %c0_102], %190 {strides = array<i32>} : memref<8x8x128xf32, #tpu.memory_space<vmem>>, vector<1x8x128xf32>,
    %191 = vector.extract_strided_slice %157 {offsets = [4, 0, 0], sizes = [1, 8, 128], strides = [1, 1, 1]} : vector<8x8x128xf32> to vector<1x8x128xf32>
    %192 = vector.shape_cast %191 : vector<1x8x128xf32> to vector<8x128xf32>
    %cst_103 = arith.constant dense<0.000000e+00> : vector<8x128xf32>
    %193 = tpu.matmul %187, %158, %cst_103 {dimension_numbers = #tpu.dot_dimension_numbers<[1], [0], [0], [1], [0, 0, 1, 1], [], []>} : vector<8x128xf32>, vector<128x128xf32>, vector<8x128xf32> -> vector<8x128xf32>
    %194 = arith.addf %192, %193 : vector<8x128xf32>
    %195 = math.tanh %194 : vector<8x128xf32>
    %c4_104 = arith.constant 4 : index
    %c0_105 = arith.constant 0 : index
    %c0_106 = arith.constant 0 : index
    %196 = vector.load %arg15[%c4_104, %c0_105, %c0_106] : memref<8x8x128xf32, #tpu.memory_space<vmem>>, vector<1x8x128xf32>
    %197 = vector.shape_cast %196 : vector<1x8x128xf32> to vector<8x128xf32>
    %198 = vector.shape_cast %195 : vector<8x128xf32> to vector<1x8x128xf32>
    tpu.vector_store %arg15[%c4_104, %c0_105, %c0_106], %198 {strides = array<i32>} : memref<8x8x128xf32, #tpu.memory_space<vmem>>, vector<1x8x128xf32>,
    %199 = vector.extract_strided_slice %157 {offsets = [5, 0, 0], sizes = [1, 8, 128], strides = [1, 1, 1]} : vector<8x8x128xf32> to vector<1x8x128xf32>
    %200 = vector.shape_cast %199 : vector<1x8x128xf32> to vector<8x128xf32>
    %cst_107 = arith.constant dense<0.000000e+00> : vector<8x128xf32>
    %201 = tpu.matmul %195, %158, %cst_107 {dimension_numbers = #tpu.dot_dimension_numbers<[1], [0], [0], [1], [0, 0, 1, 1], [], []>} : vector<8x128xf32>, vector<128x128xf32>, vector<8x128xf32> -> vector<8x128xf32>
    %202 = arith.addf %200, %201 : vector<8x128xf32>
    %203 = math.tanh %202 : vector<8x128xf32>
    %c5_108 = arith.constant 5 : index
    %c0_109 = arith.constant 0 : index
    %c0_110 = arith.constant 0 : index
    %204 = vector.load %arg15[%c5_108, %c0_109, %c0_110] : memref<8x8x128xf32, #tpu.memory_space<vmem>>, vector<1x8x128xf32>
    %205 = vector.shape_cast %204 : vector<1x8x128xf32> to vector<8x128xf32>
    %206 = vector.shape_cast %203 : vector<8x128xf32> to vector<1x8x128xf32>
    tpu.vector_store %arg15[%c5_108, %c0_109, %c0_110], %206 {strides = array<i32>} : memref<8x8x128xf32, #tpu.memory_space<vmem>>, vector<1x8x128xf32>,
    %207 = vector.extract_strided_slice %157 {offsets = [6, 0, 0], sizes = [1, 8, 128], strides = [1, 1, 1]} : vector<8x8x128xf32> to vector<1x8x128xf32>
    %208 = vector.shape_cast %207 : vector<1x8x128xf32> to vector<8x128xf32>
    %cst_111 = arith.constant dense<0.000000e+00> : vector<8x128xf32>
    %209 = tpu.matmul %203, %158, %cst_111 {dimension_numbers = #tpu.dot_dimension_numbers<[1], [0], [0], [1], [0, 0, 1, 1], [], []>} : vector<8x128xf32>, vector<128x128xf32>, vector<8x128xf32> -> vector<8x128xf32>
    %210 = arith.addf %208, %209 : vector<8x128xf32>
    %211 = math.tanh %210 : vector<8x128xf32>
    %c6_112 = arith.constant 6 : index
    %c0_113 = arith.constant 0 : index
    %c0_114 = arith.constant 0 : index
    %212 = vector.load %arg15[%c6_112, %c0_113, %c0_114] : memref<8x8x128xf32, #tpu.memory_space<vmem>>, vector<1x8x128xf32>
    %213 = vector.shape_cast %212 : vector<1x8x128xf32> to vector<8x128xf32>
    %214 = vector.shape_cast %211 : vector<8x128xf32> to vector<1x8x128xf32>
    tpu.vector_store %arg15[%c6_112, %c0_113, %c0_114], %214 {strides = array<i32>} : memref<8x8x128xf32, #tpu.memory_space<vmem>>, vector<1x8x128xf32>,
    %215 = vector.extract_strided_slice %157 {offsets = [7, 0, 0], sizes = [1, 8, 128], strides = [1, 1, 1]} : vector<8x8x128xf32> to vector<1x8x128xf32>
    %216 = vector.shape_cast %215 : vector<1x8x128xf32> to vector<8x128xf32>
    %cst_115 = arith.constant dense<0.000000e+00> : vector<8x128xf32>
    %217 = tpu.matmul %211, %158, %cst_115 {dimension_numbers = #tpu.dot_dimension_numbers<[1], [0], [0], [1], [0, 0, 1, 1], [], []>} : vector<8x128xf32>, vector<128x128xf32>, vector<8x128xf32> -> vector<8x128xf32>
    %218 = arith.addf %216, %217 : vector<8x128xf32>
    %219 = math.tanh %218 : vector<8x128xf32>
    %c7_116 = arith.constant 7 : index
    %c0_117 = arith.constant 0 : index
    %c0_118 = arith.constant 0 : index
    %220 = vector.load %arg15[%c7_116, %c0_117, %c0_118] : memref<8x8x128xf32, #tpu.memory_space<vmem>>, vector<1x8x128xf32>
    %221 = vector.shape_cast %220 : vector<1x8x128xf32> to vector<8x128xf32>
    %222 = vector.shape_cast %219 : vector<8x128xf32> to vector<1x8x128xf32>
    tpu.vector_store %arg15[%c7_116, %c0_117, %c0_118], %222 {strides = array<i32>} : memref<8x8x128xf32, #tpu.memory_space<vmem>>, vector<1x8x128xf32>,
    return
  }
}

</mosaic_0001>

<bundles_post_ra>
// kernel: tpu_custom_call.1
= control target key start
LH: loop header
LB: loop body
LE: loop exit
PB: predicated region body
PF: predicated region fallthrough
CT: control target
= control target key end

     0   :  { %21 = vsyncpa [#allocation3], 0  ;;  %s2186_s0 = inlined_call_operand.hbm [shape: f32[8,128], index: 0, kind: input, shape index: {}]   ;;  %s2187_s1 = inlined_call_operand.hbm [shape: f32[8,8,128], index: 1, kind: input, shape index: {}]   ;;  %s2188_s2 = inlined_call_operand.hbm [shape: f32[8,8,128], index: 2, kind: input, shape index: {}]   ;;  %s2189_s3 = inlined_call_operand.hbm [shape: f32[8,8,128], index: 3, kind: input, shape index: {}]   ;;  %s2190_s4 = inlined_call_operand.hbm [shape: f32[128,128], index: 4, kind: input, shape index: {}]   ;;  %s2191_s5 = inlined_call_operand.hbm [shape: f32[128,128], index: 5, kind: input, shape index: {}]   ;;  %s2192_s6 = inlined_call_operand.vmem [shape: f32[1,128], index: 6, kind: input, shape index: {}]   ;;  %s2193_s7 = inlined_call_operand.hbm [shape: f32[128,128], index: 7, kind: input, shape index: {}]   ;;  %s2194_s8 = inlined_call_operand.hbm [shape: f32[128,128], index: 8, kind: input, shape index: {}]   ;;  %s2195_s9 = inlined_call_operand.vmem [shape: f32[1,128], index: 9, kind: input, shape index: {}]   ;;  %s2196_s10 = inlined_call_operand.hbm [shape: f32[128,128], index: 10, kind: input, shape index: {}]   ;;  %s2197_s11 = inlined_call_operand.hbm [shape: f32[128,128], index: 11, kind: input, shape index: {}]   ;;  %s2198_s12 = inlined_call_operand.vmem [shape: f32[1,128], index: 12, kind: input, shape index: {}]   ;;  %s2199_s13 = inlined_call_operand.hbm [shape: f32[8,8,128], index: 13, kind: output, shape index: {0}]   ;;  %s2200_s14 = inlined_call_operand.hbm [shape: f32[8,8,128], index: 14, kind: output, shape index: {1}]   ;;  %s2201_s15 = inlined_call_operand.hbm [shape: f32[8,8,128], index: 15, kind: output, shape index: {2}]  }
   0x1   :  { %22 = vsyncpa [#allocation6], 0 }
   0x2   :  { %23 = vsyncpa [#allocation9], 0 }
   0x3   :  { %24 = vsyncpa [#allocation12], 0 }
   0x4   :  { %25 = vsyncpa [#allocation15], 0 }
   0x5   :  { %26 = vsyncpa [#allocation18], 0 }
   0x6   :  { %27 = vsyncpa [#allocation4], 0  ;;  %s44_s20 = sshll.u32 %s2187_s1, 4  ;;  %s45_s20 = int_to_ptr.hbm [resolvable:$true] %s44_s20 }
   0x7   :  { %28 = vsyncpa [#allocation21], 0  ;;  %s1487_s21 = smov [#allocation5]   ;;  %s70_s25 = sshll.u32 %s2189_s3, 4  ;;  %s71_s25 = int_to_ptr.hbm [resolvable:$true] %s70_s25 }
   0x8   :  { %s46_s22 = sshll.u32 %s1487_s21, 4  ;;  %s1488_s26 = smov 128   ;;  %s47_s22 = int_to_ptr.vmem [resolvable:$true] %s46_s22 }
   0x9   :  { %s1489_s27 = smov 8   ;;  %s1490_s28 = smov [#allocation8]  }
   0xa   :  { %52 = dma.hbm_to_vmem [thread:$0]  %s45_s20, 1024, %s47_s22, [#allocation6], %s1488_s26, %s1488_s26, %s1489_s27  }
   0xb   :  { %s72_s29 = sshll.u32 %s1490_s28, 4  ;;  %s96_s16 = sshll.u32 %s2191_s5, 4  ;;  %s73_s29 = int_to_ptr.vmem [resolvable:$true] %s72_s29  ;;  %s97_s16 = int_to_ptr.hbm [resolvable:$true] %s96_s16 }
   0xc   :  { %78 = dma.hbm_to_vmem [thread:$0]  %s71_s25, 1024, %s73_s29, [#allocation9], %s1488_s26, %s1488_s26, %s1489_s27  }
   0xd   :  { %s124_s18 = sshll.u32 %s2194_s8, 4  ;;  %s1491_s19 = smov [#allocation11]   ;;  %s125_s18 = int_to_ptr.hbm [resolvable:$true] %s124_s18 }
   0xe   :  { %s98_s21 = sshll.u32 %s1491_s19, 4  ;;  %s1492_s20 = smov [#allocation14]   ;;  %s99_s21 = int_to_ptr.vmem [resolvable:$true] %s98_s21 }
   0xf   :  { %104 = dma.hbm_to_vmem [thread:$0]  %s97_s16, 2048, %s99_s21, [#allocation12], %s1488_s26, %s1488_s26, %s1489_s27  }
  0x10   :  { %s126_s5 = sshll.u32 %s1492_s20, 4  ;;  %s34_s24 = sshll.u32 %s2186_s0, 4  ;;  %s127_s5 = int_to_ptr.vmem [resolvable:$true] %s126_s5  ;;  %s35_s24 = int_to_ptr.hbm [resolvable:$true] %s34_s24 }
  0x11   :  { %132 = dma.hbm_to_vmem [thread:$0]  %s125_s18, 2048, %s127_s5, [#allocation15], %s1488_s26, %s1488_s26, %s1489_s27  }
  0x12   :  { %s57_s28 = sshll.u32 %s2188_s2, 4  ;;  %s1493_s29 = smov [#allocation2]   ;;  %s58_s28 = int_to_ptr.hbm [resolvable:$true] %s57_s28 }
  0x13   :  { %s36_s30 = sshll.u32 %s1493_s29, 4  ;;  %s1494_s1 = smov [#allocation7]   ;;  %s37_s30 = int_to_ptr.vmem [resolvable:$true] %s36_s30 }
  0x14   :  { %39 = dma.hbm_to_vmem [thread:$0]  %s35_s24, 128, %s37_s30, [#allocation3]  }
  0x15   :  { %s59_s16 = sshll.u32 %s1494_s1, 4  ;;  %s83_s0 = sshll.u32 %s2190_s4, 4  ;;  %s60_s16 = int_to_ptr.vmem [resolvable:$true] %s59_s16  ;;  %s84_s0 = int_to_ptr.hbm [resolvable:$true] %s83_s0 }
  0x16   :  { %65 = dma.hbm_to_vmem [thread:$0]  %s58_s28, 1024, %s60_s16, [#allocation6], %s1488_s26, %s1488_s26, %s1489_s27  }
  0x17   :  { %s111_s2 = sshll.u32 %s2193_s7, 4  ;;  %s1495_s21 = smov [#allocation10]   ;;  %s112_s2 = int_to_ptr.hbm [resolvable:$true] %s111_s2 }
  0x18   :  { %s85_s20 = sshll.u32 %s1495_s21, 4  ;;  %s1496_s5 = smov [#allocation13]   ;;  %s86_s20 = int_to_ptr.vmem [resolvable:$true] %s85_s20 }
  0x19   :  { %91 = dma.hbm_to_vmem [thread:$0]  %s84_s0, 2048, %s86_s20, [#allocation9], %s1488_s26, %s1488_s26, %s1489_s27  }
  0x1a   :  { %s113_s4 = sshll.u32 %s1496_s5, 4  ;;  %s139_s24 = sshll.u32 %s2196_s10, 4  ;;  %s114_s4 = int_to_ptr.vmem [resolvable:$true] %s113_s4  ;;  %s140_s24 = int_to_ptr.hbm [resolvable:$true] %s139_s24 }
  0x1b   :  { %119 = dma.hbm_to_vmem [thread:$0]  %s112_s2, 2048, %s114_s4, [#allocation12], %s1488_s26, %s1488_s26, %s1489_s27  }
  0x1c   :  { %s152_s25 = sshll.u32 %s2197_s11, 4  ;;  %s1497_s28 = smov [#allocation16]   ;;  %s153_s25 = int_to_ptr.hbm [resolvable:$true] %s152_s25 }
  0x1d   :  { %s141_s29 = sshll.u32 %s1497_s28, 4  ;;  %s1498_s30 = smov [#allocation17]   ;;  %s142_s29 = int_to_ptr.vmem [resolvable:$true] %s141_s29 }
  0x1e   :  { %147 = dma.hbm_to_vmem [thread:$0]  %s140_s24, 2048, %s142_s29, [#allocation15], %s1488_s26, %s1488_s26, %s1489_s27  }
  0x1f   :  { %s154_s10 = sshll.u32 %s1498_s30, 4  ;;  %s155_s10 = int_to_ptr.vmem [resolvable:$true] %s154_s10 }
  0x20   :  { %160 = dma.hbm_to_vmem [thread:$0]  %s153_s25, 2048, %s155_s10, [#allocation18], %s1488_s26, %s1488_s26, %s1489_s27  }
  0x21   :  { %1471 = dma.done.wait [#allocation3], 128  }
  0x22   :  { %1472 = vsyncadd [#allocation3], 4294967168 }
  0x23   :  { %1473 = dma.done.wait [#allocation6], 2048  }
  0x24   :  { %1474 = vsyncadd [#allocation6], 4294965248 }
  0x25   :  { %1475 = dma.done.wait [#allocation9], 3072  }
  0x26   :  { %1476 = vsyncadd [#allocation9], 4294964224 }
  0x27   :  { %1477 = dma.done.wait [#allocation12], 4096  }
  0x28   :  { %1478 = vsyncadd [#allocation12], 4294963200 }
  0x29   :  { %1479 = dma.done.wait [#allocation15], 4096  }
  0x2a   :  { %1480 = vsyncadd [#allocation15], 4294963200 }
  0x2b   :  { %1481 = dma.done.wait [#allocation18], 2048  }
  0x2c   :  { %1482 = vsyncadd [#allocation18], 4294965248  ;;  %v226_v0 = vld [vmem:[#allocation10 + $0x78] sm:$0xff]  ;;  %v225_v1 = vld [vmem:[#allocation10 + $0x70] sm:$0xff]  ;;  %v1499_v33 = vmov 0.0   ;;  %s1052_s19 = sshll.u32 %s2200_s14, 4  ;;  %s1053_s19 = int_to_ptr.hbm [resolvable:$true] %s1052_s19 }
  0x2d   :  { %v1640_v2 = vld [vmem:[#allocation11 + $0x78] sm:$0xff]  ;;  %231 = vmatpush.msra.mxu0 %v226_v0  ;;  %v1643_v3 = vld [vmem:[#allocation11 + $0x70] sm:$0xff]  ;;  %v224_v4 = vld [vmem:[#allocation10 + $0x68] sm:$0xff]  ;;  %s1039_s20 = sshll.u32 %s2199_s13, 4  ;;  %s1501_s5 = smov [#allocation19]   ;;  %s1040_s20 = int_to_ptr.hbm [resolvable:$true] %s1039_s20 }
  0x2e   :  { %288 = vmatpush.msra.mxu1 %v1640_v2  ;;  %v1645_v5 = vld [vmem:[#allocation11 + $0x68] sm:$0xff]  ;;  %311 = vmatpush.msra.mxu2 %v1640_v2  ;;  %v223_v6 = vld [vmem:[#allocation10 + $0x60] sm:$0xff]  ;;  %v222_v8 = vld [vmem:[#allocation10 + $0x58] sm:$0xff]  ;;  %s1037_s4 = sshll.u32 %s1501_s5, 4  ;;  %s1502_s14 = smov [#allocation22]   ;;  %s1038_s4 = int_to_ptr.vmem [resolvable:$true] %s1037_s4 }
  0x2f   :  { %335 = vmatpush.msra.mxu3 %v1640_v2  ;;  %232 = vmatpush.msra.mxu0 %v225_v1  ;;  %v1650_v7 = vld [vmem:[#allocation11 + $0x60] sm:$0xff]  ;;  %v1655_v9 = vld [vmem:[#allocation11 + $0x58] sm:$0xff]  ;;  %v221_v10 = vld [vmem:[#allocation10 + $0x50] sm:$0xff]  ;;  %s1063_s22 = sshll.u32 %s1502_s14, 4  ;;  %s1065_s7 = sshll.u32 %s2201_s15, 4  ;;  %s1064_s22 = int_to_ptr.vmem [resolvable:$true] %s1063_s22  ;;  %s1066_s7 = int_to_ptr.hbm [resolvable:$true] %s1065_s7 }
  0x30   :  { %289 = vmatpush.msra.mxu1 %v1643_v3  ;;  %312 = vmatpush.msra.mxu2 %v1643_v3  ;;  %v1660_v11 = vld [vmem:[#allocation11 + $0x50] sm:$0xff]  ;;  %v220_v12 = vld [vmem:[#allocation10 + $0x48] sm:$0xff]  ;;  %v219_v14 = vld [vmem:[#allocation10 + $0x40] sm:$0xff] }
  0x31   :  { %336 = vmatpush.msra.mxu3 %v1643_v3  ;;  %233 = vmatpush.msra.mxu0 %v224_v4  ;;  %v1665_v13 = vld [vmem:[#allocation11 + $0x48] sm:$0xff]  ;;  %v1670_v15 = vld [vmem:[#allocation11 + $0x40] sm:$0xff]  ;;  %v218_v16 = vld [vmem:[#allocation10 + $0x38] sm:$0xff] }
  0x32   :  { %290 = vmatpush.msra.mxu1 %v1645_v5  ;;  %313 = vmatpush.msra.mxu2 %v1645_v5  ;;  %v1675_v17 = vld [vmem:[#allocation11 + $0x38] sm:$0xff]  ;;  %v217_v18 = vld [vmem:[#allocation10 + $0x30] sm:$0xff]  ;;  %v216_v20 = vld [vmem:[#allocation10 + $0x28] sm:$0xff] }
  0x33   :  { %337 = vmatpush.msra.mxu3 %v1645_v5  ;;  %234 = vmatpush.msra.mxu0 %v223_v6  ;;  %v1680_v19 = vld [vmem:[#allocation11 + $0x30] sm:$0xff]  ;;  %v1685_v21 = vld [vmem:[#allocation11 + $0x28] sm:$0xff]  ;;  %v215_v22 = vld [vmem:[#allocation10 + $0x20] sm:$0xff] }
  0x34   :  { %291 = vmatpush.msra.mxu1 %v1650_v7  ;;  %314 = vmatpush.msra.mxu2 %v1650_v7  ;;  %v1690_v23 = vld [vmem:[#allocation11 + $0x20] sm:$0xff]  ;;  %v214_v24 = vld [vmem:[#allocation10 + $0x18] sm:$0xff]  ;;  %v213_v26 = vld [vmem:[#allocation10 + $0x10] sm:$0xff] }
  0x35   :  { %338 = vmatpush.msra.mxu3 %v1650_v7  ;;  %235 = vmatpush.msra.mxu0 %v222_v8  ;;  %v1695_v25 = vld [vmem:[#allocation11 + $0x18] sm:$0xff]  ;;  %v1700_v27 = vld [vmem:[#allocation11 + $0x10] sm:$0xff]  ;;  %v212_v28 = vld [vmem:[#allocation10 + $0x8] sm:$0xff] }
  0x36   :  { %292 = vmatpush.msra.mxu1 %v1655_v9  ;;  %315 = vmatpush.msra.mxu2 %v1655_v9  ;;  %v1705_v29 = vld [vmem:[#allocation11 + $0x8] sm:$0xff]  ;;  %v211_v30 = vld [vmem:[#allocation10] sm:$0xff]  ;;  %v1804_v35 = vld [vmem:[%s2192_s6] ss:$0 sm:$0xff] }
  0x37   :  { %339 = vmatpush.msra.mxu3 %v1655_v9  ;;  %236 = vmatpush.msra.mxu0 %v221_v10  ;;  %v1710_v31 = vld [vmem:[#allocation11] sm:$0xff]  ;;  %v204_v34 = vld [vmem:[#allocation5 + $0x8] sm:$0xff]  ;;  %v205_v41 = vld [vmem:[#allocation5 + $0x10] sm:$0xff] }
  0x38   :  { %293 = vmatpush.msra.mxu1 %v1660_v11  ;;  %316 = vmatpush.msra.mxu2 %v1660_v11  ;;  %v203_v32 = vld [vmem:[#allocation5] sm:$0xff]  ;;  %v206_v47 = vld [vmem:[#allocation5 + $0x18] sm:$0xff]  ;;  %v501_v55 = vld [vmem:[#allocation13 + $0x70] sm:$0xff] }
  0x39   :  { %340 = vmatpush.msra.mxu3 %v1660_v11  ;;  %237 = vmatpush.msra.mxu0 %v220_v12  ;;  %v207_v53 = vld [vmem:[#allocation5 + $0x20] sm:$0xff]  ;;  %v502_v54 = vld [vmem:[#allocation13 + $0x78] sm:$0xff]  ;;  %v1811_v57 = vld [vmem:[#allocation14 + $0x70] sm:$0xff] }
  0x3a   :  { %294 = vmatpush.msra.mxu1 %v1665_v13  ;;  %317 = vmatpush.msra.mxu2 %v1665_v13  ;;  %v1809_v56 = vld [vmem:[#allocation14 + $0x78] sm:$0xff]  ;;  %v500_v58 = vld [vmem:[#allocation13 + $0x68] sm:$0xff]  ;;  %v499_v60 = vld [vmem:[#allocation13 + $0x60] sm:$0xff] }
  0x3b   :  { %341 = vmatpush.msra.mxu3 %v1665_v13  ;;  %238 = vmatpush.msra.mxu0 %v219_v14  ;;  %v1815_v59 = vld [vmem:[#allocation14 + $0x68] sm:$0xff]  ;;  %v1820_v61 = vld [vmem:[#allocation14 + $0x60] sm:$0xff]  ;;  %v498_v62 = vld [vmem:[#allocation13 + $0x58] sm:$0xff] }
  0x3c   :  { %295 = vmatpush.msra.mxu1 %v1670_v15  ;;  %318 = vmatpush.msra.mxu2 %v1670_v15  ;;  %v1825_v63 = vld [vmem:[#allocation14 + $0x58] sm:$0xff]  ;;  %v497_v0 = vld [vmem:[#allocation13 + $0x50] sm:$0xff]  ;;  %v495_v8 = vld [vmem:[#allocation13 + $0x40] sm:$0xff] }
  0x3d   :  { %342 = vmatpush.msra.mxu3 %v1670_v15  ;;  %239 = vmatpush.msra.mxu0 %v218_v16  ;;  %v1830_v1 = vld [vmem:[#allocation14 + $0x50] sm:$0xff]  ;;  %v494_v10 = vld [vmem:[#allocation13 + $0x38] sm:$0xff]  ;;  %v492_v14 = vld [vmem:[#allocation13 + $0x28] sm:$0xff] }
  0x3e   :  { %296 = vmatpush.msra.mxu1 %v1675_v17  ;;  %319 = vmatpush.msra.mxu2 %v1675_v17  ;;  %v493_v12 = vld [vmem:[#allocation13 + $0x30] sm:$0xff]  ;;  %v491_v16 = vld [vmem:[#allocation13 + $0x20] sm:$0xff] }
  0x3f   :  { %343 = vmatpush.msra.mxu3 %v1675_v17  ;;  %240 = vmatpush.msra.mxu0 %v217_v18  ;;  %v490_v18 = vld [vmem:[#allocation13 + $0x18] sm:$0xff] }
  0x40   :  { %297 = vmatpush.msra.mxu1 %v1680_v19  ;;  %320 = vmatpush.msra.mxu2 %v1680_v19 }
  0x41   :  { %344 = vmatpush.msra.mxu3 %v1680_v19  ;;  %241 = vmatpush.msra.mxu0 %v216_v20  ;;  %v489_v20 = vld [vmem:[#allocation13 + $0x10] sm:$0xff] }
  0x42   :  { %298 = vmatpush.msra.mxu1 %v1685_v21  ;;  %321 = vmatpush.msra.mxu2 %v1685_v21 }
  0x43   :  { %345 = vmatpush.msra.mxu3 %v1685_v21  ;;  %242 = vmatpush.msra.mxu0 %v215_v22  ;;  %v488_v22 = vld [vmem:[#allocation13 + $0x8] sm:$0xff] }
  0x44   :  { %299 = vmatpush.msra.mxu1 %v1690_v23  ;;  %322 = vmatpush.msra.mxu2 %v1690_v23 }
  0x45   :  { %346 = vmatpush.msra.mxu3 %v1690_v23  ;;  %243 = vmatpush.msra.mxu0 %v214_v24  ;;  %v208_v24 = vld [vmem:[#allocation5 + $0x28] sm:$0xff] }
  0x46   :  { %300 = vmatpush.msra.mxu1 %v1695_v25  ;;  %323 = vmatpush.msra.mxu2 %v1695_v25 }
  0x47   :  { %347 = vmatpush.msra.mxu3 %v1695_v25  ;;  %244 = vmatpush.msra.mxu0 %v213_v26  ;;  %v1875_v26 = vld [vmem:[#allocation14 + $0x8] sm:$0xff] }
  0x48   :  { %301 = vmatpush.msra.mxu1 %v1700_v27  ;;  %324 = vmatpush.msra.mxu2 %v1700_v27 }
  0x49   :  { %348 = vmatpush.msra.mxu3 %v1700_v27  ;;  %245 = vmatpush.msra.mxu0 %v212_v28  ;;  %v1879_v28 = vld [vmem:[#allocation14] sm:$0xff] }
  0x4a   :  { %302 = vmatpush.msra.mxu1 %v1705_v29  ;;  %325 = vmatpush.msra.mxu2 %v1705_v29 }
  0x4b   :  { %349 = vmatpush.msra.mxu3 %v1705_v29  ;;  %246 = vmatpush.msra.mxu0 %v211_v30 }
  0x4c   :  { %303 = vmatpush.msra.mxu1 %v1710_v31  ;;  %247 = vmatmul.f32.vlgmr.msra.gmra.mxu0 %v203_v32 }
  0x4d   :  { %304 = vmatmul.f32.vlgmr.msra.gmra.mxu1 %v1499_v33  ;;  %326 = vmatpush.msra.mxu2 %v1710_v31 }
  0x4e   :  { %350 = vmatpush.msra.mxu3 %v1710_v31  ;;  %359 = vmatpush.msrb.mxu1 %v1640_v2 }
  0x4f   :  { %383 = vmatpush.msrb.mxu2 %v1640_v2  ;;  %431 = vmatpush.msrb.mxu0 %v1640_v2 }
  0x50   :  { %407 = vmatpush.msrb.mxu3 %v1640_v2  ;;  %360 = vmatpush.msrb.mxu1 %v1643_v3 }
  0x51   :  { %384 = vmatpush.msrb.mxu2 %v1643_v3  ;;  %432 = vmatpush.msrb.mxu0 %v1643_v3 }
  0x52   :  { %408 = vmatpush.msrb.mxu3 %v1643_v3  ;;  %361 = vmatpush.msrb.mxu1 %v1645_v5 }
  0x53   :  { %385 = vmatpush.msrb.mxu2 %v1645_v5  ;;  %433 = vmatpush.msrb.mxu0 %v1645_v5 }
  0x54   :  { %409 = vmatpush.msrb.mxu3 %v1645_v5  ;;  %362 = vmatpush.msrb.mxu1 %v1650_v7 }
  0x55   :  { %386 = vmatpush.msrb.mxu2 %v1650_v7  ;;  %434 = vmatpush.msrb.mxu0 %v1650_v7 }
  0x56   :  { %410 = vmatpush.msrb.mxu3 %v1650_v7  ;;  %363 = vmatpush.msrb.mxu1 %v1655_v9 }
  0x57   :  { %387 = vmatpush.msrb.mxu2 %v1655_v9  ;;  %435 = vmatpush.msrb.mxu0 %v1655_v9 }
  0x58   :  { %411 = vmatpush.msrb.mxu3 %v1655_v9  ;;  %364 = vmatpush.msrb.mxu1 %v1660_v11 }
  0x59   :  { %388 = vmatpush.msrb.mxu2 %v1660_v11  ;;  %436 = vmatpush.msrb.mxu0 %v1660_v11 }
  0x5a   :  { %412 = vmatpush.msrb.mxu3 %v1660_v11  ;;  %365 = vmatpush.msrb.mxu1 %v1665_v13 }
  0x5b   :  { %389 = vmatpush.msrb.mxu2 %v1665_v13  ;;  %437 = vmatpush.msrb.mxu0 %v1665_v13 }
  0x5c   :  { %413 = vmatpush.msrb.mxu3 %v1665_v13  ;;  %366 = vmatpush.msrb.mxu1 %v1670_v15 }
  0x5d   :  { %390 = vmatpush.msrb.mxu2 %v1670_v15  ;;  %438 = vmatpush.msrb.mxu0 %v1670_v15 }
  0x5e   :  { %414 = vmatpush.msrb.mxu3 %v1670_v15  ;;  %367 = vmatpush.msrb.mxu1 %v1675_v17 }
  0x5f   :  { %391 = vmatpush.msrb.mxu2 %v1675_v17  ;;  %439 = vmatpush.msrb.mxu0 %v1675_v17 }
  0x60   :  { %415 = vmatpush.msrb.mxu3 %v1675_v17  ;;  %368 = vmatpush.msrb.mxu1 %v1680_v19 }
  0x61   :  { %392 = vmatpush.msrb.mxu2 %v1680_v19  ;;  %440 = vmatpush.msrb.mxu0 %v1680_v19 }
  0x62   :  { %416 = vmatpush.msrb.mxu3 %v1680_v19  ;;  %369 = vmatpush.msrb.mxu1 %v1685_v21 }
  0x63   :  { %393 = vmatpush.msrb.mxu2 %v1685_v21  ;;  %441 = vmatpush.msrb.mxu0 %v1685_v21 }
  0x64   :  { %417 = vmatpush.msrb.mxu3 %v1685_v21  ;;  %370 = vmatpush.msrb.mxu1 %v1690_v23 }
  0x65   :  { %394 = vmatpush.msrb.mxu2 %v1690_v23  ;;  %442 = vmatpush.msrb.mxu0 %v1690_v23 }
  0x66   :  { %418 = vmatpush.msrb.mxu3 %v1690_v23  ;;  %371 = vmatpush.msrb.mxu1 %v1695_v25 }
  0x67   :  { %395 = vmatpush.msrb.mxu2 %v1695_v25  ;;  %443 = vmatpush.msrb.mxu0 %v1695_v25 }
  0x68   :  { %419 = vmatpush.msrb.mxu3 %v1695_v25  ;;  %372 = vmatpush.msrb.mxu1 %v1700_v27 }
  0x69   :  { %396 = vmatpush.msrb.mxu2 %v1700_v27  ;;  %444 = vmatpush.msrb.mxu0 %v1700_v27 }
  0x6a   :  { %420 = vmatpush.msrb.mxu3 %v1700_v27  ;;  %373 = vmatpush.msrb.mxu1 %v1705_v29 }
  0x6b   :  { %397 = vmatpush.msrb.mxu2 %v1705_v29  ;;  %445 = vmatpush.msrb.mxu0 %v1705_v29 }
  0x6c   :  { %421 = vmatpush.msrb.mxu3 %v1705_v29  ;;  %374 = vmatpush.msrb.mxu1 %v1710_v31 }
  0x6d   :  { %398 = vmatpush.msrb.mxu2 %v1710_v31  ;;  %446 = vmatpush.msrb.mxu0 %v1710_v31 }
  0x6e   :  { %422 = vmatpush.msrb.mxu3 %v1710_v31  ;;  %455 = vmatpush.msra.mxu1 %v1640_v2  ;;  %v496_v2 = vld [vmem:[#allocation13 + $0x48] sm:$0xff] }
  0x6f   :  { %250 = vmatmul.f32.gmra.mxu0 %v204_v34 }
  0x70   :  { %456 = vmatpush.msra.mxu1 %v1643_v3  ;;  %587 = vmatpush.msra.mxu0 %v1809_v56 }
  0x72   :  { %457 = vmatpush.msra.mxu1 %v1645_v5  ;;  %588 = vmatpush.msra.mxu0 %v1811_v57 }
  0x74   :  { %458 = vmatpush.msra.mxu1 %v1650_v7  ;;  %589 = vmatpush.msra.mxu0 %v1815_v59 }
  0x76   :  { %459 = vmatpush.msra.mxu1 %v1655_v9  ;;  %590 = vmatpush.msra.mxu0 %v1820_v61  ;;  %v1840_v9 = vld [vmem:[#allocation14 + $0x48] sm:$0xff] }
  0x77   :  { %253 = vmatmul.f32.gmra.mxu0 %v205_v41 }
  0x78   :  { %460 = vmatpush.msra.mxu1 %v1660_v11  ;;  %591 = vmatpush.msra.mxu0 %v1825_v63  ;;  %v1845_v11 = vld [vmem:[#allocation14 + $0x40] sm:$0xff] }
  0x7a   :  { %461 = vmatpush.msra.mxu1 %v1665_v13  ;;  %592 = vmatpush.msra.mxu0 %v1830_v1  ;;  %v1848_v13 = vld [vmem:[#allocation14 + $0x38] sm:$0xff] }
  0x7c   :  { %462 = vmatpush.msra.mxu1 %v1670_v15  ;;  %593 = vmatpush.msra.mxu0 %v1840_v9  ;;  %v1853_v15 = vld [vmem:[#allocation14 + $0x30] sm:$0xff] }
  0x7e   :  { %463 = vmatpush.msra.mxu1 %v1675_v17  ;;  %594 = vmatpush.msra.mxu0 %v1845_v11  ;;  %v1858_v17 = vld [vmem:[#allocation14 + $0x28] sm:$0xff] }
  0x7f   :  { %256 = vmatmul.f32.gmra.mxu0 %v206_v47 }
  0x80   :  { %464 = vmatpush.msra.mxu1 %v1680_v19  ;;  %595 = vmatpush.msra.mxu0 %v1848_v13  ;;  %v1863_v19 = vld [vmem:[#allocation14 + $0x20] sm:$0xff] }
  0x82   :  { %465 = vmatpush.msra.mxu1 %v1685_v21  ;;  %596 = vmatpush.msra.mxu0 %v1853_v15  ;;  %v1868_v21 = vld [vmem:[#allocation14 + $0x18] sm:$0xff] }
  0x84   :  { %466 = vmatpush.msra.mxu1 %v1690_v23  ;;  %597 = vmatpush.msra.mxu0 %v1858_v17  ;;  %v1873_v23 = vld [vmem:[#allocation14 + $0x10] sm:$0xff] }
  0x86   :  { %467 = vmatpush.msra.mxu1 %v1695_v25  ;;  %598 = vmatpush.msra.mxu0 %v1863_v19  ;;  %v487_v25 = vld [vmem:[#allocation13] sm:$0xff] }
  0x87   :  { %259 = vmatmul.f32.gmra.mxu0 %v207_v53 }
  0x88   :  { %468 = vmatpush.msra.mxu1 %v1700_v27  ;;  %v479_v27 = vld [vmem:[#allocation7] sm:$0xff]  ;;  %599 = vmatpush.msra.mxu0 %v1868_v21 }
  0x8a   :  { %469 = vmatpush.msra.mxu1 %v1705_v29  ;;  %600 = vmatpush.msra.mxu0 %v1873_v23  ;;  %v209_v29 = vld [vmem:[#allocation5 + $0x30] sm:$0xff] }
  0x8c   :  { %470 = vmatpush.msra.mxu1 %v1710_v31  ;;  %601 = vmatpush.msra.mxu0 %v1875_v26 }
  0x8e   :  { %602 = vmatpush.msra.mxu0 %v1879_v28 }
  0x8f   :  { %262 = vmatmul.f32.gmra.mxu0 %v208_v24 }
  0x97   :  { %265 = vmatmul.f32.gmra.mxu0 %v209_v29 }
  0xc9   :  { %v248_v36 = vpop.f32.mrf.mxu0 }
  0xca   :  { %v305_v37 = vpop.f32.mrf.mxu1  ;;  %v249_v38 = vadd.f32 %v1804_v35, %v248_v36 }
  0xcc   :  { %v308_v39 = vadd.f32 %v305_v37, %v249_v38  ;;  %v480_v37 = vld [vmem:[#allocation7 + $0x8] sm:$0xff] }
  0xce   :  { %1111 = vtanh.f32 %v308_v39 }
  0xd4   :  { %v1112_v40 = vpop.eup %1111 }
  0xd5   :  { %310 = vst [vmem:[#allocation19] sm:$0xff] %v1112_v40  ;;  %327 = vmatmul.f32.vlgmr.msra.gmra.mxu2 %v1112_v40 }
  0xd6   :  { %507 = vmatpush.msra.mxu2 %v502_v54 }
  0xd8   :  { %508 = vmatpush.msra.mxu2 %v501_v55 }
  0xda   :  { %509 = vmatpush.msra.mxu2 %v500_v58 }
  0xdc   :  { %510 = vmatpush.msra.mxu2 %v499_v60 }
  0xde   :  { %511 = vmatpush.msra.mxu2 %v498_v62 }
  0xe0   :  { %512 = vmatpush.msra.mxu2 %v497_v0 }
  0xe2   :  { %513 = vmatpush.msra.mxu2 %v496_v2 }
  0xe4   :  { %514 = vmatpush.msra.mxu2 %v495_v8 }
  0xe6   :  { %515 = vmatpush.msra.mxu2 %v494_v10 }
  0xe8   :  { %516 = vmatpush.msra.mxu2 %v493_v12  ;;  %v484_v12 = vld [vmem:[#allocation7 + $0x28] sm:$0xff] }
  0xea   :  { %517 = vmatpush.msra.mxu2 %v492_v14 }
  0xec   :  { %v251_v42 = vpop.f32.mrf.mxu0  ;;  %518 = vmatpush.msra.mxu2 %v491_v16 }
  0xed   :  { %v252_v43 = vadd.f32 %v1804_v35, %v251_v42  ;;  %v1944_v42 = vld [vmem:[%s2195_s9] ss:$0 sm:$0xff] }
  0xee   :  { %519 = vmatpush.msra.mxu2 %v490_v18 }
  0xf0   :  { %520 = vmatpush.msra.mxu2 %v489_v20 }
  0xf2   :  { %521 = vmatpush.msra.mxu2 %v488_v22 }
  0xf4   :  { %v254_v48 = vpop.f32.mrf.mxu0  ;;  %522 = vmatpush.msra.mxu2 %v487_v25  ;;  %v780_v25 = vld [vmem:[#allocation16 + $0x78] sm:$0xff] }
  0xf5   :  { %v255_v49 = vadd.f32 %v1804_v35, %v254_v48 }
  0xfc   :  { %v257_v3 = vpop.f32.mrf.mxu0 }
  0xfd   :  { %v258_v4 = vadd.f32 %v1804_v35, %v257_v3 }
 0x104   :  { %v260_v30 = vpop.f32.mrf.mxu0 }
 0x105   :  { %v261_v31 = vadd.f32 %v1804_v35, %v260_v30  ;;  %v778_v30 = vld [vmem:[#allocation16 + $0x68] sm:$0xff] }
 0x10c   :  { %v263_v38 = vpop.f32.mrf.mxu0 }
 0x10d   :  { %v264_v39 = vadd.f32 %v1804_v35, %v263_v38  ;;  %v2009_v38 = vld [vmem:[#allocation17 + $0x50] sm:$0xff] }
 0x158   :  { %v328_v44 = vpop.f32.mrf.mxu2 }
 0x159   :  { %v331_v45 = vadd.f32 %v328_v44, %v252_v43 }
 0x15b   :  { %1113 = vtanh.f32 %v331_v45 }
 0x161   :  { %v1114_v46 = vpop.eup %1113 }
 0x162   :  { %334 = vst [vmem:[#allocation19 + $0x8] sm:$0xff] %v1114_v46  ;;  %351 = vmatmul.f32.vlgmr.msra.gmra.mxu3 %v1114_v46 }
 0x163   :  { %564 = vmatpush.msra.mxu3 %v1809_v56 }
 0x165   :  { %565 = vmatpush.msra.mxu3 %v1811_v57 }
 0x167   :  { %566 = vmatpush.msra.mxu3 %v1815_v59 }
 0x169   :  { %567 = vmatpush.msra.mxu3 %v1820_v61 }
 0x16b   :  { %568 = vmatpush.msra.mxu3 %v1825_v63 }
 0x16d   :  { %569 = vmatpush.msra.mxu3 %v1830_v1 }
 0x16f   :  { %570 = vmatpush.msra.mxu3 %v1840_v9 }
 0x171   :  { %571 = vmatpush.msra.mxu3 %v1845_v11 }
 0x173   :  { %572 = vmatpush.msra.mxu3 %v1848_v13 }
 0x175   :  { %573 = vmatpush.msra.mxu3 %v1853_v15 }
 0x177   :  { %574 = vmatpush.msra.mxu3 %v1858_v17 }
 0x179   :  { %575 = vmatpush.msra.mxu3 %v1863_v19 }
 0x17b   :  { %576 = vmatpush.msra.mxu3 %v1868_v21 }
 0x17d   :  { %577 = vmatpush.msra.mxu3 %v1873_v23 }
 0x17f   :  { %578 = vmatpush.msra.mxu3 %v1875_v26 }
 0x181   :  { %579 = vmatpush.msra.mxu3 %v1879_v28 }
 0x1e5   :  { %v352_v50 = vpop.f32.mrf.mxu3 }
 0x1e6   :  { %v355_v51 = vadd.f32 %v352_v50, %v255_v49  ;;  %v481_v49 = vld [vmem:[#allocation7 + $0x10] sm:$0xff]  ;;  %v266_v50 = vpop.f32.mrf.mxu0 }
 0x1e8   :  { %1115 = vtanh.f32 %v355_v51 }
 0x1ee   :  { %v1116_v52 = vpop.eup %1115 }
 0x1ef   :  { %358 = vst [vmem:[#allocation19 + $0x10] sm:$0xff] %v1116_v52  ;;  %375 = vmatmul.f32.vlgmr.msrb.gmra.mxu1 %v1116_v52  ;;  %v267_v52 = vadd.f32 %v1804_v35, %v266_v50 }
 0x1f0   :  { %611 = vmatpush.msrb.mxu1 %v1809_v56 }
 0x1f2   :  { %612 = vmatpush.msrb.mxu1 %v1811_v57 }
 0x1f4   :  { %613 = vmatpush.msrb.mxu1 %v1815_v59 }
 0x1f6   :  { %614 = vmatpush.msrb.mxu1 %v1820_v61 }
 0x1f8   :  { %615 = vmatpush.msrb.mxu1 %v1825_v63 }
 0x1fa   :  { %616 = vmatpush.msrb.mxu1 %v1830_v1 }
 0x1fc   :  { %617 = vmatpush.msrb.mxu1 %v1840_v9 }
 0x1fe   :  { %618 = vmatpush.msrb.mxu1 %v1845_v11 }
 0x200   :  { %619 = vmatpush.msrb.mxu1 %v1848_v13 }
 0x202   :  { %620 = vmatpush.msrb.mxu1 %v1853_v15 }
 0x204   :  { %621 = vmatpush.msrb.mxu1 %v1858_v17 }
 0x206   :  { %622 = vmatpush.msrb.mxu1 %v1863_v19 }
 0x208   :  { %623 = vmatpush.msrb.mxu1 %v1868_v21 }
 0x20a   :  { %624 = vmatpush.msrb.mxu1 %v1873_v23 }
 0x20c   :  { %625 = vmatpush.msrb.mxu1 %v1875_v26 }
 0x20e   :  { %626 = vmatpush.msrb.mxu1 %v1879_v28 }
 0x26c   :  { %v376_v5 = vpop.f32.mrf.mxu1 }
 0x26d   :  { %v379_v6 = vadd.f32 %v376_v5, %v258_v4 }
 0x26f   :  { %1117 = vtanh.f32 %v379_v6 }
 0x275   :  { %v1118_v7 = vpop.eup %1117 }
 0x276   :  { %382 = vst [vmem:[#allocation19 + $0x18] sm:$0xff] %v1118_v7  ;;  %399 = vmatmul.f32.vlgmr.msrb.gmra.mxu2 %v1118_v7  ;;  %v483_v7 = vld [vmem:[#allocation7 + $0x20] sm:$0xff] }
 0x277   :  { %707 = vmatpush.msrb.mxu2 %v1809_v56 }
 0x279   :  { %708 = vmatpush.msrb.mxu2 %v1811_v57 }
 0x27b   :  { %709 = vmatpush.msrb.mxu2 %v1815_v59 }
 0x27d   :  { %710 = vmatpush.msrb.mxu2 %v1820_v61 }
 0x27e   :  { %523 = vmatmul.f32.vlgmr.msra.gmra.mxu2 %v479_v27  ;;  %v1989_v27 = vld [vmem:[#allocation17 + $0x78] sm:$0xff] }
 0x27f   :  { %711 = vmatpush.msrb.mxu2 %v1825_v63 }
 0x281   :  { %712 = vmatpush.msrb.mxu2 %v1830_v1 }
 0x283   :  { %713 = vmatpush.msrb.mxu2 %v1840_v9 }
 0x285   :  { %714 = vmatpush.msrb.mxu2 %v1845_v11 }
 0x286   :  { %526 = vmatmul.f32.gmra.mxu2 %v480_v37  ;;  %v775_v37 = vld [vmem:[#allocation16 + $0x50] sm:$0xff] }
 0x287   :  { %715 = vmatpush.msrb.mxu2 %v1848_v13 }
 0x289   :  { %716 = vmatpush.msrb.mxu2 %v1853_v15 }
 0x28b   :  { %717 = vmatpush.msrb.mxu2 %v1858_v17 }
 0x28d   :  { %718 = vmatpush.msrb.mxu2 %v1863_v19 }
 0x28e   :  { %529 = vmatmul.f32.gmra.mxu2 %v481_v49 }
 0x28f   :  { %719 = vmatpush.msrb.mxu2 %v1868_v21 }
 0x291   :  { %720 = vmatpush.msrb.mxu2 %v1873_v23 }
 0x293   :  { %721 = vmatpush.msrb.mxu2 %v1875_v26 }
 0x295   :  { %722 = vmatpush.msrb.mxu2 %v1879_v28 }
 0x297   :  { %865 = vmatpush.msra.mxu2 %v1989_v27 }
 0x2f9   :  { %v400_v32 = vpop.f32.mrf.mxu2 }
 0x2fa   :  { %v403_v34 = vadd.f32 %v400_v32, %v261_v31  ;;  %v1994_v31 = vld [vmem:[#allocation17 + $0x68] sm:$0xff]  ;;  %v777_v32 = vld [vmem:[#allocation16 + $0x60] sm:$0xff] }
 0x2fc   :  { %1119 = vtanh.f32 %v403_v34  ;;  %v1999_v34 = vld [vmem:[#allocation17 + $0x60] sm:$0xff] }
 0x301   :  { %v524_v43 = vpop.f32.mrf.mxu2 }
 0x302   :  { %v1120_v36 = vpop.eup %1119  ;;  %v525_v44 = vadd.f32 %v1944_v42, %v524_v43  ;;  %v773_v43 = vld [vmem:[#allocation16 + $0x40] sm:$0xff] }
 0x303   :  { %406 = vst [vmem:[#allocation19 + $0x20] sm:$0xff] %v1120_v36  ;;  %423 = vmatmul.f32.vlgmr.msrb.gmra.mxu3 %v1120_v36  ;;  %v776_v36 = vld [vmem:[#allocation16 + $0x58] sm:$0xff] }
 0x304   :  { %635 = vmatpush.msrb.mxu3 %v1809_v56 }
 0x306   :  { %636 = vmatpush.msrb.mxu3 %v1811_v57 }
 0x308   :  { %637 = vmatpush.msrb.mxu3 %v1815_v59 }
 0x309   :  { %v527_v55 = vpop.f32.mrf.mxu2 }
 0x30a   :  { %638 = vmatpush.msrb.mxu3 %v1820_v61  ;;  %v528_v58 = vadd.f32 %v1944_v42, %v527_v55  ;;  %v2040_v55 = vld [vmem:[#allocation17 + $0x28] sm:$0xff] }
 0x30b   :  { %580 = vmatmul.f32.vlgmr.msra.gmra.mxu3 %v1499_v33  ;;  %v210_v33 = vld [vmem:[#allocation5 + $0x38] sm:$0xff] }
 0x30c   :  { %639 = vmatpush.msrb.mxu3 %v1825_v63  ;;  %268 = vmatmul.f32.gmra.mxu0 %v210_v33  ;;  %v2004_v33 = vld [vmem:[#allocation17 + $0x58] sm:$0xff] }
 0x30e   :  { %640 = vmatpush.msrb.mxu3 %v1830_v1 }
 0x310   :  { %641 = vmatpush.msrb.mxu3 %v1840_v9 }
 0x312   :  { %642 = vmatpush.msrb.mxu3 %v1845_v11 }
 0x314   :  { %643 = vmatpush.msrb.mxu3 %v1848_v13 }
 0x316   :  { %644 = vmatpush.msrb.mxu3 %v1853_v15 }
 0x318   :  { %645 = vmatpush.msrb.mxu3 %v1858_v17 }
 0x31a   :  { %646 = vmatpush.msrb.mxu3 %v1863_v19 }
 0x31c   :  { %647 = vmatpush.msrb.mxu3 %v1868_v21 }
 0x31e   :  { %648 = vmatpush.msrb.mxu3 %v1873_v23 }
 0x320   :  { %649 = vmatpush.msrb.mxu3 %v1875_v26 }
 0x322   :  { %650 = vmatpush.msrb.mxu3 %v1879_v28 }
 0x324   :  { %731 = vmatpush.msra.mxu3 %v1809_v56 }
 0x326   :  { %732 = vmatpush.msra.mxu3 %v1811_v57 }
 0x328   :  { %733 = vmatpush.msra.mxu3 %v1815_v59 }
 0x32a   :  { %734 = vmatpush.msra.mxu3 %v1820_v61 }
 0x32c   :  { %735 = vmatpush.msra.mxu3 %v1825_v63 }
 0x32e   :  { %736 = vmatpush.msra.mxu3 %v1830_v1 }
 0x330   :  { %737 = vmatpush.msra.mxu3 %v1840_v9 }
 0x332   :  { %738 = vmatpush.msra.mxu3 %v1845_v11 }
 0x334   :  { %739 = vmatpush.msra.mxu3 %v1848_v13 }
 0x336   :  { %740 = vmatpush.msra.mxu3 %v1853_v15 }
 0x338   :  { %741 = vmatpush.msra.mxu3 %v1858_v17 }
 0x33a   :  { %742 = vmatpush.msra.mxu3 %v1863_v19 }
 0x33c   :  { %743 = vmatpush.msra.mxu3 %v1868_v21 }
 0x33e   :  { %744 = vmatpush.msra.mxu3 %v1873_v23 }
 0x340   :  { %745 = vmatpush.msra.mxu3 %v1875_v26 }
 0x342   :  { %746 = vmatpush.msra.mxu3 %v1879_v28 }
 0x386   :  { %v424_v40 = vpop.f32.mrf.mxu3 }
 0x387   :  { %v427_v41 = vadd.f32 %v424_v40, %v264_v39  ;;  %v774_v39 = vld [vmem:[#allocation16 + $0x48] sm:$0xff] }
 0x388   :  { %v2014_v40 = vld [vmem:[#allocation17 + $0x48] sm:$0xff] }
 0x389   :  { %1121 = vtanh.f32 %v427_v41  ;;  %v269_v51 = vpop.f32.mrf.mxu0 }
 0x38e   :  { %v581_v45 = vpop.f32.mrf.mxu3 }
 0x38f   :  { %v1122_v46 = vpop.eup %1121  ;;  %v584_v47 = vadd.f32 %v581_v45, %v525_v44  ;;  %v2021_v44 = vld [vmem:[#allocation17 + $0x40] sm:$0xff]  ;;  %v772_v45 = vld [vmem:[#allocation16 + $0x38] sm:$0xff] }
 0x390   :  { %430 = vst [vmem:[#allocation19 + $0x28] sm:$0xff] %v1122_v46  ;;  %447 = vmatmul.f32.vlgmr.msrb.gmra.mxu0 %v1122_v46  ;;  %v2026_v46 = vld [vmem:[#allocation17 + $0x38] sm:$0xff] }
 0x391   :  { %1123 = vtanh.f32 %v584_v47  ;;  %659 = vmatpush.msrb.mxu0 %v1809_v56  ;;  %v771_v47 = vld [vmem:[#allocation16 + $0x30] sm:$0xff] }
 0x393   :  { %660 = vmatpush.msrb.mxu0 %v1811_v57 }
 0x395   :  { %661 = vmatpush.msrb.mxu0 %v1815_v59 }
 0x397   :  { %v1124_v48 = vpop.eup %1123  ;;  %662 = vmatpush.msrb.mxu0 %v1820_v61 }
 0x398   :  { %586 = vst [vmem:[#allocation20] sm:$0xff] %v1124_v48  ;;  %603 = vmatmul.f32.vlgmr.msra.gmra.mxu0 %v1124_v48 }
 0x399   :  { %663 = vmatpush.msrb.mxu0 %v1825_v63 }
 0x39b   :  { %664 = vmatpush.msrb.mxu0 %v1830_v1 }
 0x39d   :  { %665 = vmatpush.msrb.mxu0 %v1840_v9 }
 0x39f   :  { %666 = vmatpush.msrb.mxu0 %v1845_v11 }
 0x3a1   :  { %667 = vmatpush.msrb.mxu0 %v1848_v13 }
 0x3a3   :  { %668 = vmatpush.msrb.mxu0 %v1853_v15 }
 0x3a5   :  { %669 = vmatpush.msrb.mxu0 %v1858_v17 }
 0x3a7   :  { %670 = vmatpush.msrb.mxu0 %v1863_v19 }
 0x3a9   :  { %671 = vmatpush.msrb.mxu0 %v1868_v21 }
 0x3ab   :  { %672 = vmatpush.msrb.mxu0 %v1873_v23 }
 0x3ad   :  { %673 = vmatpush.msrb.mxu0 %v1875_v26 }
 0x3af   :  { %674 = vmatpush.msrb.mxu0 %v1879_v28 }
 0x3b1   :  { %785 = vmatpush.msra.mxu0 %v780_v25  ;;  %v761_v25 = vld [vmem:[#allocation8 + $0x20] sm:$0xff] }
 0x40d   :  { %v448_v53 = vpop.f32.mrf.mxu0 }
 0x40e   :  { %v451_v54 = vadd.f32 %v448_v53, %v267_v52  ;;  %v770_v52 = vld [vmem:[#allocation16 + $0x28] sm:$0xff]  ;;  %v2037_v53 = vld [vmem:[#allocation17 + $0x30] sm:$0xff] }
 0x410   :  { %1125 = vtanh.f32 %v451_v54  ;;  %v769_v54 = vld [vmem:[#allocation16 + $0x20] sm:$0xff] }
 0x415   :  { %v604_v60 = vpop.f32.mrf.mxu0 }
 0x416   :  { %v1126_v62 = vpop.eup %1125  ;;  %v607_v0 = vadd.f32 %v604_v60, %v528_v58  ;;  %v768_v58 = vld [vmem:[#allocation16 + $0x18] sm:$0xff]  ;;  %v2045_v60 = vld [vmem:[#allocation17 + $0x20] sm:$0xff] }
 0x417   :  { %454 = vst [vmem:[#allocation19 + $0x30] sm:$0xff] %v1126_v62  ;;  %471 = vmatmul.f32.vlgmr.msra.gmra.mxu1 %v1126_v62  ;;  %v767_v62 = vld [vmem:[#allocation16 + $0x10] sm:$0xff] }
 0x418   :  { %1127 = vtanh.f32 %v607_v0  ;;  %683 = vmatpush.msra.mxu1 %v1809_v56  ;;  %v482_v56 = vld [vmem:[#allocation7 + $0x18] sm:$0xff] }
 0x419   :  { %532 = vmatmul.f32.gmra.mxu2 %v482_v56  ;;  %v2050_v0 = vld [vmem:[#allocation17 + $0x18] sm:$0xff]  ;;  %v2055_v56 = vld [vmem:[#allocation17 + $0x10] sm:$0xff] }
 0x41a   :  { %684 = vmatpush.msra.mxu1 %v1811_v57  ;;  %v270_v57 = vadd.f32 %v1804_v35, %v269_v51 }
 0x41c   :  { %685 = vmatpush.msra.mxu1 %v1815_v59 }
 0x41e   :  { %v1128_v2 = vpop.eup %1127  ;;  %686 = vmatpush.msra.mxu1 %v1820_v61 }
 0x41f   :  { %610 = vst [vmem:[#allocation20 + $0x8] sm:$0xff] %v1128_v2  ;;  %627 = vmatmul.f32.vlgmr.msrb.gmra.mxu1 %v1128_v2  ;;  %v766_v2 = vld [vmem:[#allocation16 + $0x8] sm:$0xff] }
 0x420   :  { %687 = vmatpush.msra.mxu1 %v1825_v63  ;;  %v530_v63 = vpop.f32.mrf.mxu2 }
 0x421   :  { %535 = vmatmul.f32.gmra.mxu2 %v483_v7 }
 0x422   :  { %688 = vmatpush.msra.mxu1 %v1830_v1  ;;  %v531_v1 = vadd.f32 %v1944_v42, %v530_v63  ;;  %v2065_v63 = vld [vmem:[#allocation17] sm:$0xff] }
 0x424   :  { %689 = vmatpush.msra.mxu1 %v1840_v9 }
 0x426   :  { %690 = vmatpush.msra.mxu1 %v1845_v11 }
 0x428   :  { %691 = vmatpush.msra.mxu1 %v1848_v13  ;;  %v485_v13 = vld [vmem:[#allocation7 + $0x30] sm:$0xff] }
 0x429   :  { %538 = vmatmul.f32.gmra.mxu2 %v484_v12 }
 0x42a   :  { %692 = vmatpush.msra.mxu1 %v1853_v15 }
 0x42c   :  { %693 = vmatpush.msra.mxu1 %v1858_v17 }
 0x42e   :  { %694 = vmatpush.msra.mxu1 %v1863_v19  ;;  %v486_v19 = vld [vmem:[#allocation7 + $0x38] sm:$0xff] }
 0x430   :  { %695 = vmatpush.msra.mxu1 %v1868_v21 }
 0x431   :  { %541 = vmatmul.f32.gmra.mxu2 %v485_v13  ;;  %v759_v13 = vld [vmem:[#allocation8 + $0x10] sm:$0xff] }
 0x432   :  { %696 = vmatpush.msra.mxu1 %v1873_v23 }
 0x434   :  { %697 = vmatpush.msra.mxu1 %v1875_v26  ;;  %v779_v26 = vld [vmem:[#allocation16 + $0x70] sm:$0xff] }
 0x435   :  { %786 = vmatpush.msra.mxu0 %v779_v26 }
 0x436   :  { %698 = vmatpush.msra.mxu1 %v1879_v28  ;;  %v1992_v28 = vld [vmem:[#allocation17 + $0x70] sm:$0xff] }
 0x437   :  { %866 = vmatpush.msra.mxu2 %v1992_v28  ;;  %787 = vmatpush.msra.mxu0 %v778_v30 }
 0x438   :  { %842 = vmatpush.msrb.mxu1 %v1989_v27 }
 0x439   :  { %544 = vmatmul.f32.gmra.mxu2 %v486_v19  ;;  %788 = vmatpush.msra.mxu0 %v777_v32  ;;  %v760_v19 = vld [vmem:[#allocation8 + $0x18] sm:$0xff]  ;;  %v763_v32 = vld [vmem:[#allocation8 + $0x30] sm:$0xff] }
 0x43a   :  { %843 = vmatpush.msrb.mxu1 %v1992_v28  ;;  %867 = vmatpush.msra.mxu2 %v1994_v31 }
 0x43b   :  { %789 = vmatpush.msra.mxu0 %v776_v36 }
 0x43c   :  { %844 = vmatpush.msrb.mxu1 %v1994_v31  ;;  %868 = vmatpush.msra.mxu2 %v1999_v34 }
 0x43d   :  { %790 = vmatpush.msra.mxu0 %v775_v37 }
 0x43e   :  { %845 = vmatpush.msrb.mxu1 %v1999_v34  ;;  %869 = vmatpush.msra.mxu2 %v2004_v33 }
 0x43f   :  { %791 = vmatpush.msra.mxu0 %v774_v39  ;;  %v764_v39 = vld [vmem:[#allocation8 + $0x38] sm:$0xff] }
 0x440   :  { %846 = vmatpush.msrb.mxu1 %v2004_v33  ;;  %870 = vmatpush.msra.mxu2 %v2009_v38 }
 0x441   :  { %792 = vmatpush.msra.mxu0 %v773_v43 }
 0x442   :  { %847 = vmatpush.msrb.mxu1 %v2009_v38  ;;  %871 = vmatpush.msra.mxu2 %v2014_v40 }
 0x443   :  { %793 = vmatpush.msra.mxu0 %v772_v45 }
 0x444   :  { %848 = vmatpush.msrb.mxu1 %v2014_v40  ;;  %872 = vmatpush.msra.mxu2 %v2021_v44 }
 0x445   :  { %794 = vmatpush.msra.mxu0 %v771_v47 }
 0x446   :  { %849 = vmatpush.msrb.mxu1 %v2021_v44  ;;  %873 = vmatpush.msra.mxu2 %v2026_v46 }
 0x447   :  { %795 = vmatpush.msra.mxu0 %v770_v52 }
 0x448   :  { %850 = vmatpush.msrb.mxu1 %v2026_v46  ;;  %874 = vmatpush.msra.mxu2 %v2037_v53 }
 0x449   :  { %796 = vmatpush.msra.mxu0 %v769_v54 }
 0x44a   :  { %851 = vmatpush.msrb.mxu1 %v2037_v53  ;;  %875 = vmatpush.msra.mxu2 %v2040_v55 }
 0x44b   :  { %797 = vmatpush.msra.mxu0 %v768_v58 }
 0x44c   :  { %852 = vmatpush.msrb.mxu1 %v2040_v55  ;;  %876 = vmatpush.msra.mxu2 %v2045_v60 }
 0x44d   :  { %798 = vmatpush.msra.mxu0 %v767_v62 }
 0x44e   :  { %853 = vmatpush.msrb.mxu1 %v2045_v60  ;;  %877 = vmatpush.msra.mxu2 %v2050_v0 }
 0x44f   :  { %799 = vmatpush.msra.mxu0 %v766_v2 }
 0x450   :  { %854 = vmatpush.msrb.mxu1 %v2050_v0  ;;  %878 = vmatpush.msra.mxu2 %v2055_v56 }
 0x452   :  { %855 = vmatpush.msrb.mxu1 %v2055_v56 }
 0x494   :  { %v472_v59 = vpop.f32.mrf.mxu1 }
 0x495   :  { %v475_v61 = vadd.f32 %v472_v59, %v270_v57  ;;  %v765_v57 = vld [vmem:[#allocation16] sm:$0xff]  ;;  %v2060_v59 = vld [vmem:[#allocation17 + $0x8] sm:$0xff] }
 0x496   :  { %800 = vmatpush.msra.mxu0 %v765_v57  ;;  %856 = vmatpush.msrb.mxu1 %v2060_v59 }
 0x497   :  { %1129 = vtanh.f32 %v475_v61  ;;  %v757_v61 = vld [vmem:[#allocation8] sm:$0xff]  ;;  %879 = vmatpush.msra.mxu2 %v2060_v59 }
 0x498   :  { %857 = vmatpush.msrb.mxu1 %v2065_v63 }
 0x499   :  { %880 = vmatpush.msra.mxu2 %v2065_v63 }
 0x49c   :  { %v628_v3 = vpop.f32.mrf.mxu1  ;;  %v533_v8 = vpop.f32.mrf.mxu2 }
 0x49d   :  { %v1983_v4 = vpop.eup %1129  ;;  %v631_v5 = vadd.f32 %v628_v3, %v531_v1  ;;  %v534_v35 = vadd.f32 %v1944_v42, %v533_v8  ;;  %v2158_v8 = vld [vmem:[%s2198_s12] ss:$0 sm:$0xff]  ;;  %s1500_s12 = smov [#allocation20]  }
 0x49e   :  { %478 = vst [vmem:[#allocation19 + $0x38] sm:$0xff] %v1983_v4  ;;  %s1050_s17 = sshll.u32 %s1500_s12, 4  ;;  %s1051_s17 = int_to_ptr.vmem [resolvable:$true] %s1050_s17 }
 0x49f   :  { %1131 = vtanh.f32 %v631_v5  ;;  %1045 = dma.vmem_to_hbm [thread:$0]  %s1038_s4, 1024, %s1040_s20, [#allocation4], %s1488_s26, %s1488_s26, %s1489_s27  }
 0x4a4   :  { %v536_v14 = vpop.f32.mrf.mxu2 }
 0x4a5   :  { %v1132_v6 = vpop.eup %1131  ;;  %v537_v15 = vadd.f32 %v1944_v42, %v536_v14 }
 0x4a6   :  { %634 = vst [vmem:[#allocation20 + $0x10] sm:$0xff] %v1132_v6  ;;  %651 = vmatmul.f32.vlgmr.msrb.gmra.mxu3 %v1132_v6 }
 0x4a7   :  { %889 = vmatpush.msrb.mxu3 %v1989_v27 }
 0x4a9   :  { %890 = vmatpush.msrb.mxu3 %v1992_v28 }
 0x4ab   :  { %891 = vmatpush.msrb.mxu3 %v1994_v31 }
 0x4ac   :  { %v539_v20 = vpop.f32.mrf.mxu2 }
 0x4ad   :  { %v540_v21 = vadd.f32 %v1944_v42, %v539_v20  ;;  %892 = vmatpush.msrb.mxu3 %v1999_v34 }
 0x4af   :  { %893 = vmatpush.msrb.mxu3 %v2004_v33 }
 0x4b1   :  { %894 = vmatpush.msrb.mxu3 %v2009_v38 }
 0x4b3   :  { %895 = vmatpush.msrb.mxu3 %v2014_v40 }
 0x4b4   :  { %v542_v29 = vpop.f32.mrf.mxu2 }
 0x4b5   :  { %896 = vmatpush.msrb.mxu3 %v2021_v44  ;;  %v543_v48 = vadd.f32 %v1944_v42, %v542_v29 }
 0x4b7   :  { %897 = vmatpush.msrb.mxu3 %v2026_v46 }
 0x4b9   :  { %898 = vmatpush.msrb.mxu3 %v2037_v53 }
 0x4bb   :  { %899 = vmatpush.msrb.mxu3 %v2040_v55 }
 0x4bc   :  { %v2019_v41 = vpop.f32.mrf.mxu2 }
 0x4bd   :  { %900 = vmatpush.msrb.mxu3 %v2045_v60  ;;  %v546_v1 = vadd.f32 %v1944_v42, %v2019_v41 }
 0x4bf   :  { %901 = vmatpush.msrb.mxu3 %v2050_v0 }
 0x4c1   :  { %902 = vmatpush.msrb.mxu3 %v2055_v56 }
 0x4c3   :  { %903 = vmatpush.msrb.mxu3 %v2060_v59 }
 0x4c5   :  { %904 = vmatpush.msrb.mxu3 %v2065_v63 }
 0x529   :  { %v652_v9 = vpop.f32.mrf.mxu3 }
 0x52a   :  { %v655_v10 = vadd.f32 %v652_v9, %v534_v35 }
 0x52c   :  { %1133 = vtanh.f32 %v655_v10 }
 0x532   :  { %v1134_v11 = vpop.eup %1133 }
 0x533   :  { %658 = vst [vmem:[#allocation20 + $0x18] sm:$0xff] %v1134_v11  ;;  %675 = vmatmul.f32.vlgmr.msrb.gmra.mxu0 %v1134_v11 }
 0x534   :  { %985 = vmatpush.msrb.mxu0 %v1989_v27 }
 0x536   :  { %986 = vmatpush.msrb.mxu0 %v1992_v28 }
 0x538   :  { %987 = vmatpush.msrb.mxu0 %v1994_v31 }
 0x53a   :  { %988 = vmatpush.msrb.mxu0 %v1999_v34 }
 0x53b   :  { %801 = vmatmul.f32.vlgmr.msra.gmra.mxu0 %v757_v61 }
 0x53c   :  { %989 = vmatpush.msrb.mxu0 %v2004_v33 }
 0x53e   :  { %990 = vmatpush.msrb.mxu0 %v2009_v38 }
 0x540   :  { %991 = vmatpush.msrb.mxu0 %v2014_v40 }
 0x542   :  { %992 = vmatpush.msrb.mxu0 %v2021_v44 }
 0x544   :  { %993 = vmatpush.msrb.mxu0 %v2026_v46 }
 0x546   :  { %994 = vmatpush.msrb.mxu0 %v2037_v53 }
 0x548   :  { %995 = vmatpush.msrb.mxu0 %v2040_v55 }
 0x54a   :  { %996 = vmatpush.msrb.mxu0 %v2045_v60 }
 0x54c   :  { %997 = vmatpush.msrb.mxu0 %v2050_v0 }
 0x54e   :  { %998 = vmatpush.msrb.mxu0 %v2055_v56 }
 0x550   :  { %999 = vmatpush.msrb.mxu0 %v2060_v59 }
 0x552   :  { %1000 = vmatpush.msrb.mxu0 %v2065_v63 }
 0x5b0   :  { %v676_v16 = vpop.f32.mrf.mxu0 }
 0x5b1   :  { %v679_v17 = vadd.f32 %v676_v16, %v537_v15 }
 0x5b3   :  { %1135 = vtanh.f32 %v679_v17 }
 0x5b8   :  { %v802_v35 = vpop.f32.mrf.mxu0 }
 0x5b9   :  { %v1136_v18 = vpop.eup %1135  ;;  %v803_v9 = vadd.f32 %v2158_v8, %v802_v35 }
 0x5ba   :  { %682 = vst [vmem:[#allocation20 + $0x20] sm:$0xff] %v1136_v18  ;;  %699 = vmatmul.f32.vlgmr.msra.gmra.mxu1 %v1136_v18 }
 0x5bb   :  { %913 = vmatpush.msra.mxu1 %v1989_v27 }
 0x5bd   :  { %914 = vmatpush.msra.mxu1 %v1992_v28 }
 0x5bf   :  { %915 = vmatpush.msra.mxu1 %v1994_v31 }
 0x5c1   :  { %916 = vmatpush.msra.mxu1 %v1999_v34 }
 0x5c3   :  { %917 = vmatpush.msra.mxu1 %v2004_v33 }
 0x5c5   :  { %918 = vmatpush.msra.mxu1 %v2009_v38 }
 0x5c7   :  { %919 = vmatpush.msra.mxu1 %v2014_v40 }
 0x5c9   :  { %920 = vmatpush.msra.mxu1 %v2021_v44 }
 0x5cb   :  { %921 = vmatpush.msra.mxu1 %v2026_v46 }
 0x5cd   :  { %922 = vmatpush.msra.mxu1 %v2037_v53 }
 0x5cf   :  { %923 = vmatpush.msra.mxu1 %v2040_v55 }
 0x5d1   :  { %924 = vmatpush.msra.mxu1 %v2045_v60 }
 0x5d3   :  { %925 = vmatpush.msra.mxu1 %v2050_v0 }
 0x5d5   :  { %926 = vmatpush.msra.mxu1 %v2055_v56 }
 0x5d7   :  { %927 = vmatpush.msra.mxu1 %v2060_v59 }
 0x5d9   :  { %928 = vmatpush.msra.mxu1 %v2065_v63 }
 0x637   :  { %v700_v22 = vpop.f32.mrf.mxu1 }
 0x638   :  { %v703_v23 = vadd.f32 %v700_v22, %v540_v21 }
 0x63a   :  { %1137 = vtanh.f32 %v703_v23 }
 0x640   :  { %v1138_v24 = vpop.eup %1137 }
 0x641   :  { %706 = vst [vmem:[#allocation20 + $0x28] sm:$0xff] %v1138_v24  ;;  %723 = vmatmul.f32.vlgmr.msrb.gmra.mxu2 %v1138_v24 }
 0x642   :  { %937 = vmatpush.msrb.mxu2 %v1989_v27 }
 0x644   :  { %938 = vmatpush.msrb.mxu2 %v1992_v28 }
 0x646   :  { %939 = vmatpush.msrb.mxu2 %v1994_v31 }
 0x648   :  { %940 = vmatpush.msrb.mxu2 %v1999_v34 }
 0x64a   :  { %941 = vmatpush.msrb.mxu2 %v2004_v33 }
 0x64c   :  { %942 = vmatpush.msrb.mxu2 %v2009_v38 }
 0x64e   :  { %943 = vmatpush.msrb.mxu2 %v2014_v40 }
 0x650   :  { %944 = vmatpush.msrb.mxu2 %v2021_v44 }
 0x652   :  { %945 = vmatpush.msrb.mxu2 %v2026_v46 }
 0x654   :  { %946 = vmatpush.msrb.mxu2 %v2037_v53 }
 0x656   :  { %947 = vmatpush.msrb.mxu2 %v2040_v55 }
 0x658   :  { %948 = vmatpush.msrb.mxu2 %v2045_v60 }
 0x65a   :  { %949 = vmatpush.msrb.mxu2 %v2050_v0 }
 0x65c   :  { %950 = vmatpush.msrb.mxu2 %v2055_v56 }
 0x65e   :  { %951 = vmatpush.msrb.mxu2 %v2060_v59 }
 0x660   :  { %952 = vmatpush.msrb.mxu2 %v2065_v63 }
 0x6c4   :  { %v724_v49 = vpop.f32.mrf.mxu2 }
 0x6c5   :  { %v727_v50 = vadd.f32 %v724_v49, %v543_v48 }
 0x6c7   :  { %1139 = vtanh.f32 %v727_v50 }
 0x6cd   :  { %v1140_v51 = vpop.eup %1139 }
 0x6ce   :  { %730 = vst [vmem:[#allocation20 + $0x30] sm:$0xff] %v1140_v51  ;;  %747 = vmatmul.f32.vlgmr.msra.gmra.mxu3 %v1140_v51 }
 0x6cf   :  { %961 = vmatpush.msra.mxu3 %v1989_v27 }
 0x6d1   :  { %962 = vmatpush.msra.mxu3 %v1992_v28 }
 0x6d3   :  { %963 = vmatpush.msra.mxu3 %v1994_v31 }
 0x6d5   :  { %964 = vmatpush.msra.mxu3 %v1999_v34 }
 0x6d7   :  { %965 = vmatpush.msra.mxu3 %v2004_v33 }
 0x6d9   :  { %966 = vmatpush.msra.mxu3 %v2009_v38 }
 0x6db   :  { %967 = vmatpush.msra.mxu3 %v2014_v40 }
 0x6dd   :  { %968 = vmatpush.msra.mxu3 %v2021_v44 }
 0x6df   :  { %969 = vmatpush.msra.mxu3 %v2026_v46 }
 0x6e1   :  { %970 = vmatpush.msra.mxu3 %v2037_v53 }
 0x6e3   :  { %971 = vmatpush.msra.mxu3 %v2040_v55 }
 0x6e5   :  { %972 = vmatpush.msra.mxu3 %v2045_v60 }
 0x6e7   :  { %973 = vmatpush.msra.mxu3 %v2050_v0 }
 0x6e9   :  { %974 = vmatpush.msra.mxu3 %v2055_v56 }
 0x6eb   :  { %975 = vmatpush.msra.mxu3 %v2060_v59 }
 0x6ed   :  { %976 = vmatpush.msra.mxu3 %v2065_v63 }
 0x751   :  { %v748_v3 = vpop.f32.mrf.mxu3 }
 0x752   :  { %v751_v5 = vadd.f32 %v748_v3, %v546_v1 }
 0x754   :  { %1141 = vtanh.f32 %v751_v5 }
 0x75a   :  { %v1142_v42 = vpop.eup %1141 }
 0x75b   :  { %754 = vst [vmem:[#allocation20 + $0x38] sm:$0xff] %v1142_v42  ;;  %v755_v6 = vadd.f32 %v1142_v42, %v1983_v4  ;;  %v758_v4 = vld [vmem:[#allocation8 + $0x8] sm:$0xff] }
 0x75c   :  { %804 = vmatmul.f32.gmra.mxu0 %v758_v4  ;;  %1058 = dma.vmem_to_hbm [thread:$0]  %s1051_s17, 1024, %s1053_s19, [#allocation21], %s1488_s26, %s1488_s26, %s1489_s27  }
 0x75d   :  { %v756_v7 = vmul.f32 0.5, %v755_v6 }
 0x75f   :  { %858 = vmatmul.f32.vlgmr.msrb.gmra.mxu1 %v756_v7 }
 0x760   :  { %1009 = vmatpush.msrb.mxu1 %v1989_v27 }
 0x762   :  { %1010 = vmatpush.msrb.mxu1 %v1992_v28 }
 0x764   :  { %1011 = vmatpush.msrb.mxu1 %v1994_v31  ;;  %807 = vmatmul.f32.gmra.mxu0 %v759_v13  ;;  %v762_v31 = vld [vmem:[#allocation8 + $0x28] sm:$0xff] }
 0x766   :  { %1012 = vmatpush.msrb.mxu1 %v1999_v34 }
 0x768   :  { %1013 = vmatpush.msrb.mxu1 %v2004_v33 }
 0x76a   :  { %1014 = vmatpush.msrb.mxu1 %v2009_v38 }
 0x76c   :  { %1015 = vmatpush.msrb.mxu1 %v2014_v40  ;;  %810 = vmatmul.f32.gmra.mxu0 %v760_v19 }
 0x76e   :  { %1016 = vmatpush.msrb.mxu1 %v2021_v44 }
 0x770   :  { %1017 = vmatpush.msrb.mxu1 %v2026_v46 }
 0x772   :  { %1018 = vmatpush.msrb.mxu1 %v2037_v53 }
 0x774   :  { %1019 = vmatpush.msrb.mxu1 %v2040_v55  ;;  %813 = vmatmul.f32.gmra.mxu0 %v761_v25 }
 0x776   :  { %1020 = vmatpush.msrb.mxu1 %v2045_v60 }
 0x778   :  { %1021 = vmatpush.msrb.mxu1 %v2050_v0 }
 0x77a   :  { %1022 = vmatpush.msrb.mxu1 %v2055_v56 }
 0x77c   :  { %1023 = vmatpush.msrb.mxu1 %v2060_v59  ;;  %816 = vmatmul.f32.gmra.mxu0 %v762_v31 }
 0x77e   :  { %1024 = vmatpush.msrb.mxu1 %v2065_v63 }
 0x784   :  { %819 = vmatmul.f32.gmra.mxu0 %v763_v32 }
 0x78c   :  { %822 = vmatmul.f32.gmra.mxu0 %v764_v39 }
 0x7d9   :  { %v805_v14 = vpop.f32.mrf.mxu0 }
 0x7da   :  { %v806_v15 = vadd.f32 %v2158_v8, %v805_v14 }
 0x7dc   :  { %v859_v10 = vpop.f32.mrf.mxu1 }
 0x7dd   :  { %v862_v11 = vadd.f32 %v859_v10, %v803_v9 }
 0x7df   :  { %1143 = vtanh.f32 %v862_v11 }
 0x7e1   :  { %v808_v20 = vpop.f32.mrf.mxu0 }
 0x7e2   :  { %v809_v21 = vadd.f32 %v2158_v8, %v808_v20 }
 0x7e5   :  { %v1144_v12 = vpop.eup %1143 }
 0x7e6   :  { %864 = vst [vmem:[#allocation22] sm:$0xff] %v1144_v12  ;;  %881 = vmatmul.f32.vlgmr.msra.gmra.mxu2 %v1144_v12 }
 0x7e9   :  { %v811_v26 = vpop.f32.mrf.mxu0 }
 0x7ea   :  { %v812_v27 = vadd.f32 %v2158_v8, %v811_v26 }
 0x7f1   :  { %v814_v34 = vpop.f32.mrf.mxu0 }
 0x7f2   :  { %v815_v36 = vadd.f32 %v2158_v8, %v814_v34 }
 0x7f9   :  { %v817_v40 = vpop.f32.mrf.mxu0 }
 0x7fa   :  { %v818_v41 = vadd.f32 %v2158_v8, %v817_v40 }
 0x801   :  { %v820_v46 = vpop.f32.mrf.mxu0 }
 0x802   :  { %v821_v48 = vadd.f32 %v2158_v8, %v820_v46 }
 0x809   :  { %v823_v47 = vpop.f32.mrf.mxu0 }
 0x80a   :  { %v824_v52 = vadd.f32 %v2158_v8, %v823_v47 }
 0x869   :  { %v882_v16 = vpop.f32.mrf.mxu2 }
 0x86a   :  { %v885_v17 = vadd.f32 %v882_v16, %v806_v15 }
 0x86c   :  { %1145 = vtanh.f32 %v885_v17 }
 0x872   :  { %v1146_v18 = vpop.eup %1145 }
 0x873   :  { %888 = vst [vmem:[#allocation22 + $0x8] sm:$0xff] %v1146_v18  ;;  %905 = vmatmul.f32.vlgmr.msrb.gmra.mxu3 %v1146_v18 }
 0x8f6   :  { %v906_v22 = vpop.f32.mrf.mxu3 }
 0x8f7   :  { %v909_v23 = vadd.f32 %v906_v22, %v809_v21 }
 0x8f9   :  { %1147 = vtanh.f32 %v909_v23 }
 0x8ff   :  { %v1148_v24 = vpop.eup %1147 }
 0x900   :  { %912 = vst [vmem:[#allocation22 + $0x10] sm:$0xff] %v1148_v24  ;;  %929 = vmatmul.f32.vlgmr.msra.gmra.mxu1 %v1148_v24 }
 0x97d   :  { %v930_v28 = vpop.f32.mrf.mxu1 }
 0x97e   :  { %v933_v29 = vadd.f32 %v930_v28, %v812_v27 }
 0x980   :  { %1149 = vtanh.f32 %v933_v29 }
 0x986   :  { %v1150_v30 = vpop.eup %1149 }
 0x987   :  { %936 = vst [vmem:[#allocation22 + $0x18] sm:$0xff] %v1150_v30  ;;  %953 = vmatmul.f32.vlgmr.msrb.gmra.mxu2 %v1150_v30 }
 0xa0a   :  { %v954_v33 = vpop.f32.mrf.mxu2 }
 0xa0b   :  { %v957_v37 = vadd.f32 %v954_v33, %v815_v36 }
 0xa0d   :  { %1151 = vtanh.f32 %v957_v37 }
 0xa13   :  { %v1152_v38 = vpop.eup %1151 }
 0xa14   :  { %960 = vst [vmem:[#allocation22 + $0x20] sm:$0xff] %v1152_v38  ;;  %977 = vmatmul.f32.vlgmr.msra.gmra.mxu3 %v1152_v38 }
 0xa97   :  { %v978_v43 = vpop.f32.mrf.mxu3 }
 0xa98   :  { %v981_v44 = vadd.f32 %v978_v43, %v818_v41 }
 0xa9a   :  { %1153 = vtanh.f32 %v981_v44 }
 0xaa0   :  { %v1154_v45 = vpop.eup %1153 }
 0xaa1   :  { %984 = vst [vmem:[#allocation22 + $0x28] sm:$0xff] %v1154_v45  ;;  %1001 = vmatmul.f32.vlgmr.msrb.gmra.mxu0 %v1154_v45 }
 0xb1e   :  { %v1002_v49 = vpop.f32.mrf.mxu0 }
 0xb1f   :  { %v1005_v50 = vadd.f32 %v1002_v49, %v821_v48 }
 0xb21   :  { %1155 = vtanh.f32 %v1005_v50 }
 0xb27   :  { %v1156_v51 = vpop.eup %1155 }
 0xb28   :  { %1008 = vst [vmem:[#allocation22 + $0x30] sm:$0xff] %v1156_v51  ;;  %1025 = vmatmul.f32.vlgmr.msrb.gmra.mxu1 %v1156_v51 }
 0xba5   :  { %v1026_v53 = vpop.f32.mrf.mxu1 }
 0xba6   :  { %v1029_v54 = vadd.f32 %v1026_v53, %v824_v52 }
 0xba8   :  { %1157 = vtanh.f32 %v1029_v54 }
 0xbae   :  { %v1158_v55 = vpop.eup %1157 }
 0xbaf   :  { %1032 = vst [vmem:[#allocation22 + $0x38] sm:$0xff] %v1158_v55 }
 0xbb0   :  { %1071 = dma.vmem_to_hbm [thread:$0]  %s1064_s22, 1024, %s1066_s7, [#allocation21], %s1488_s26, %s1488_s26, %s1489_s27  }
 0xbb1   :  { %1483 = dma.done.wait [#allocation4], 1024  }
 0xbb2   :  { %1484 = vsyncadd [#allocation4], 4294966272 }
 0xbb3   :  { %1485 = dma.done.wait [#allocation21], 2048  }
 0xbb4   :  { %1486 = vsyncadd [#allocation21], 4294965248 }
 0xbb5   :  { %1084 = vsyncpa [#allocation3], 1 }
 0xbb6   :  { %1085 = vsyncpa [#allocation6], 1 }
 0xbb7   :  { %1086 = vsyncpa [#allocation9], 1 }
 0xbb8   :  { %1087 = vsyncpa [#allocation12], 1 }
 0xbb9   :  { %1088 = vsyncpa [#allocation15], 1 }
 0xbba   :  { %1089 = vsyncpa [#allocation18], 1 }
 0xbbb   :  { %1090 = vsyncpa [#allocation4], 1 }
 0xbbc   :  { %1091 = vsyncpa [#allocation21], 1 }

</bundles_post_ra>
